<compile_context>
chip_gen: v6e
topology: v6e:2x2x1
jax: 0.10.0
libtpu: 0.0.40
codegen_flags: <defaults>
</compile_context>

<pallas_src>
import functools

import jax
import jax.numpy as jnp
from jax.experimental import pallas as pl
from jax.experimental.pallas import tpu as pltpu

BN_EPS = 1e-5


def _round_up(v, m):
    return ((v + m - 1) // m) * m


def _nonlocal_kernel(xp_ref,      # (1, 4*M, Cp)  pooled-window-gathered keys (per batch)
                     xq_ref,      # (1, TQ, Cp)   query tile
                     wpg_ref,     # (Cp, 2*Ip)    bf16, [w_phi | w_g]
                     bpg_ref,     # (1, 2*Ip)     f32
                     wth_ref,     # (Cp, Ip)      bf16
                     bth_ref,     # (1, Ip)       f32
                     wout_ref,    # (Ip, Cp)      bf16, w_W * bn_scale
                     shift_ref,   # (1, Cp)       f32, (b_W - mean)*scale + beta
                     o_ref,       # (1, TQ, Cp)
                     phi_sc,      # VMEM (M, Ip)  bf16
                     g_sc):       # VMEM (M, Ip)  bf16
    q = pl.program_id(1)
    m_pool = phi_sc.shape[0]
    i_pad = phi_sc.shape[1]

    # --- per-batch key projection + 2x2 max-pool, computed once (q == 0) -----
    @pl.when(q == 0)
    def _():
        xp = xp_ref[0].astype(jnp.bfloat16)                        # (4M, Cp)
        pg = jnp.dot(xp, wpg_ref[...],
                     preferred_element_type=jnp.float32) + bpg_ref[...]   # (4M, 2I)
        p0 = pg[0 * m_pool:1 * m_pool]
        p1 = pg[1 * m_pool:2 * m_pool]
        p2 = pg[2 * m_pool:3 * m_pool]
        p3 = pg[3 * m_pool:4 * m_pool]
        pooled = jnp.maximum(jnp.maximum(p0, p1), jnp.maximum(p2, p3))    # (M, 2I)
        phi_sc[...] = pooled[:, :i_pad].astype(jnp.bfloat16)
        g_sc[...] = pooled[:, i_pad:].astype(jnp.bfloat16)

    # --- per-query-tile attention --------------------------------------------
    xq = xq_ref[0]                                                  # (TQ, Cp) f32
    theta = jnp.dot(xq.astype(jnp.bfloat16), wth_ref[...],
                    preferred_element_type=jnp.float32) + bth_ref[...]    # (TQ, I)

    # scores: (TQ, M) = theta @ phi^T  (contraction over inter-channels)
    f = jax.lax.dot_general(theta.astype(jnp.bfloat16), phi_sc[...],
                            dimension_numbers=(((1,), (1,)), ((), ())),
                            preferred_element_type=jnp.float32)

    f = f - jnp.max(f, axis=-1, keepdims=True)
    e = jnp.exp(f)
    inv_den = pl.reciprocal(jnp.sum(e, axis=-1, keepdims=True), approx=True)

    # y = softmax(f) @ g, with the 1/sum folded into the (TQ, I) epilogue
    y = jnp.dot(e.astype(jnp.bfloat16), g_sc[...],
                preferred_element_type=jnp.float32) * inv_den       # (TQ, I)

    # fused W-conv + eval-mode BN, then residual
    wy = jnp.dot(y.astype(jnp.bfloat16), wout_ref[...],
                 preferred_element_type=jnp.float32) + shift_ref[...]     # (TQ, Cp)
    o_ref[0] = wy + xq


def nonlocal_block_pallas(x_nchw, params, tq_max=512):
    """x_nchw: (B, C, H, W) float32.  Returns (B, C, H, W) float32."""
    B, C, H, W = x_nchw.shape
    assert H % 2 == 0 and W % 2 == 0, "sub_sample=True needs even H, W"
    I = params["w_theta"].shape[1]
    N = H * W
    M = (H // 2) * (W // 2)

    # lane-dense padding of channel dims
    Cp = _round_up(C, 128)
    Ip = _round_up(I, 128)

    # query tile: largest multiple-of-8 candidate that divides N
    tq = N
    for cand in (tq_max, 256, 128, 64, 32, 16, 8):
        if cand <= N and N % cand == 0:
            tq = cand
            break

    # ---- activations: channels-last, channel-padded -------------------------
    x_nhwc = jnp.transpose(x_nchw, (0, 2, 3, 1))                    # (B, H, W, C)
    x_nhwc = jnp.pad(x_nhwc, ((0, 0), (0, 0), (0, 0), (0, Cp - C)))
    x_full = x_nhwc.reshape(B, N, Cp)                               # (B, N, Cp)

    # keys in pooled-window layout: group k (k = 2*dh + dw) at rows [k*M:(k+1)*M]
    xb = x_nhwc.reshape(B, H // 2, 2, W // 2, 2, Cp)
    x_pool = jnp.transpose(xb, (0, 2, 4, 1, 3, 5)).reshape(B, 4 * M, Cp)

    # ---- parameters: fuse phi|g, fold W-conv + BN, pad, cast to bf16 ---------
    def pad2(a, rows, cols):
        return jnp.zeros((rows, cols), a.dtype).at[:a.shape[0], :a.shape[1]].set(a)

    w_pg = jnp.zeros((Cp, 2 * Ip), jnp.float32)
    w_pg = w_pg.at[:C, :I].set(params["w_phi"]).at[:C, Ip:Ip + I].set(params["w_g"])
    b_pg = jnp.zeros((1, 2 * Ip), jnp.float32)
    b_pg = b_pg.at[:, :I].set(params["b_phi"]).at[:, Ip:Ip + I].set(params["b_g"])

    w_th = pad2(params["w_theta"], Cp, Ip)
    b_th = pad2(params["b_theta"], 1, Ip)

    scale = params["bn_gamma"] * jax.lax.rsqrt(params["bn_var"] + BN_EPS)   # (1, C)
    w_out = params["w_W"] * scale                                           # (I, C)
    shift = (params["b_W"] - params["bn_mean"]) * scale + params["bn_beta"]  # (1, C)
    w_out = pad2(w_out, Ip, Cp)
    shift = pad2(shift, 1, Cp)

    w_pg = w_pg.astype(jnp.bfloat16)
    w_th = w_th.astype(jnp.bfloat16)
    w_out = w_out.astype(jnp.bfloat16)

    grid = (B, N // tq)

    out = pl.pallas_call(
        _nonlocal_kernel,
        out_shape=jax.ShapeDtypeStruct((B, N, Cp), jnp.float32),
        grid=grid,
        in_specs=[
            pl.BlockSpec((1, 4 * M, Cp), lambda b, q: (b, 0, 0)),   # keys, per-batch resident
            pl.BlockSpec((1, tq, Cp), lambda b, q: (b, q, 0)),      # query tile
            pl.BlockSpec((Cp, 2 * Ip), lambda b, q: (0, 0)),
            pl.BlockSpec((1, 2 * Ip), lambda b, q: (0, 0)),
            pl.BlockSpec((Cp, Ip), lambda b, q: (0, 0)),
            pl.BlockSpec((1, Ip), lambda b, q: (0, 0)),
            pl.BlockSpec((Ip, Cp), lambda b, q: (0, 0)),
            pl.BlockSpec((1, Cp), lambda b, q: (0, 0)),
        ],
        out_specs=pl.BlockSpec((1, tq, Cp), lambda b, q: (b, q, 0)),
        scratch_shapes=[
            pltpu.VMEM((M, Ip), jnp.bfloat16),   # pooled phi
            pltpu.VMEM((M, Ip), jnp.bfloat16),   # pooled g
        ],
        compiler_params=pltpu.CompilerParams(
            # batch axis megacore-parallel; query tiles reuse per-batch scratch
            dimension_semantics=("parallel", "arbitrary"),
            # explicit bound: comfortably under v7x's 64 MiB physical VMEM
            vmem_limit_bytes=48 * 1024 * 1024,
        ),
    )(x_pool, x_full, w_pg, b_pg, w_th, b_th, w_out, shift)

    # strip channel padding, back to NCHW
    out = out[:, :, :C]
    return jnp.transpose(out, (0, 2, 1)).reshape(B, C, H, W)


def nonlocal_block_reference(x_nchw, params):
    """Plain-JAX f32 reference mirroring the PyTorch forward (eval-mode BN)."""
    B, C, H, W = x_nchw.shape
    I = params["w_theta"].shape[1]
    N, M = H * W, (H // 2) * (W // 2)
    xf = jnp.transpose(x_nchw, (0, 2, 3, 1)).reshape(B, N, C)       # (B, N, C)

    theta = xf @ params["w_theta"] + params["b_theta"]              # (B, N, I)
    phi_f = xf @ params["w_phi"] + params["b_phi"]
    g_f = xf @ params["w_g"] + params["b_g"]

    def pool(a):
        a = a.reshape(B, H // 2, 2, W // 2, 2, I)
        return jnp.max(a, axis=(2, 4)).reshape(B, M, I)

    phi_p, g_p = pool(phi_f), pool(g_f)
    f = jnp.einsum("bni,bmi->bnm", theta, phi_p)
    attn = jax.nn.softmax(f, axis=-1)
    y = jnp.einsum("bnm,bmi->bni", attn, g_p)
    wy = y @ params["w_W"] + params["b_W"]
    bn = ((wy - params["bn_mean"]) / jnp.sqrt(params["bn_var"] + BN_EPS)
          * params["bn_gamma"] + params["bn_beta"])
    z = bn + xf
    return jnp.transpose(z, (0, 2, 1)).reshape(B, C, H, W)


def make_params(key, C, I):
    ks = jax.random.split(key, 10)
    scale = 0.1
    return {
        "w_g": scale * jax.random.normal(ks[0], (C, I), jnp.float32),
        "b_g": scale * jax.random.normal(ks[1], (1, I), jnp.float32),
        "w_theta": scale * jax.random.normal(ks[2], (C, I), jnp.float32),
        "b_theta": scale * jax.random.normal(ks[3], (1, I), jnp.float32),
        "w_phi": scale * jax.random.normal(ks[4], (C, I), jnp.float32),
        "b_phi": scale * jax.random.normal(ks[5], (1, I), jnp.float32),
        "w_W": scale * jax.random.normal(ks[6], (I, C), jnp.float32),
        "b_W": scale * jax.random.normal(ks[7], (1, C), jnp.float32),
        # eval-mode BatchNorm.  PyTorch inits gamma=beta=0 (identity block);
        # use non-zero deterministic values so the path is exercised.
        "bn_gamma": 1.0 + scale * jax.random.normal(ks[8], (1, C), jnp.float32),
        "bn_beta": scale * jax.random.normal(ks[9], (1, C), jnp.float32),
        "bn_mean": jnp.zeros((1, C), jnp.float32),
        "bn_var": jnp.ones((1, C), jnp.float32),
    }


if __name__ == "__main__":
    B, C, H, W = 2, 8, 16, 16
    I = C // 2  # inter_channels = in_channels // 2

    key = jax.random.PRNGKey(0)
    k_x, k_p = jax.random.split(key)
    x = jax.random.normal(k_x, (B, C, H, W), jnp.float32)
    params = make_params(k_p, C, I)

    run = jax.jit(functools.partial(nonlocal_block_pallas))
    out = jax.block_until_ready(run(x, params))
    ref = jax.block_until_ready(nonlocal_block_reference(x, params))

    if out.shape != (B, C, H, W):
        raise AssertionError(f"bad output shape {out.shape}")
    # bf16 matmul operands + approx-reciprocal softmax => slightly looser
    # tolerance than a pure-f32 comparison.
    if not jnp.allclose(out, ref, atol=3e-2, rtol=3e-2):
        err = float(jnp.max(jnp.abs(out - ref)))
        raise AssertionError(f"kernel does not match reference, max err {err}")

    print("KERNEL_OK")
</pallas_src>

<mosaic_0001>
module attributes {stable_mosaic.version = 11 : i64} {
  func.func @_nonlocal_kernel(%arg0: i32, %arg1: i32, %arg2: memref<1x256x128xf32, #tpu.memory_space<vmem>>, %arg3: memref<1x256x128xf32, #tpu.memory_space<vmem>>, %arg4: memref<128x256xbf16, #tpu.memory_space<vmem>>, %arg5: memref<1x256xf32, #tpu.memory_space<vmem>>, %arg6: memref<128x128xbf16, #tpu.memory_space<vmem>>, %arg7: memref<1x128xf32, #tpu.memory_space<vmem>>, %arg8: memref<128x128xbf16, #tpu.memory_space<vmem>>, %arg9: memref<1x128xf32, #tpu.memory_space<vmem>>, %arg10: memref<1x256x128xf32, #tpu.memory_space<vmem>>, %arg11: memref<64x128xbf16, #tpu.memory_space<vmem>>, %arg12: memref<64x128xbf16, #tpu.memory_space<vmem>>) attributes {dimension_semantics = [#tpu.dimension_semantics<parallel>, #tpu.dimension_semantics<arbitrary>], iteration_bounds = array<i64: 2, 1>, scalar_prefetch = 0 : i64, scratch_operands = 2 : i64, tpu.core_type = #tpu.core_type<tc>, window_params = [{transform_indices = @transform_0, window_bounds = array<i64: 1, 256, 128>}, {transform_indices = @transform_1, window_bounds = array<i64: 1, 256, 128>}, {pipeline_mode = #tpu.pipeline_mode<synchronous>, transform_indices = @transform_2, window_bounds = array<i64: 128, 256>}, {pipeline_mode = #tpu.pipeline_mode<synchronous>, transform_indices = @transform_3, window_bounds = array<i64: 1, 256>}, {pipeline_mode = #tpu.pipeline_mode<synchronous>, transform_indices = @transform_4, window_bounds = array<i64: 128, 128>}, {pipeline_mode = #tpu.pipeline_mode<synchronous>, transform_indices = @transform_5, window_bounds = array<i64: 1, 128>}, {pipeline_mode = #tpu.pipeline_mode<synchronous>, transform_indices = @transform_6, window_bounds = array<i64: 128, 128>}, {pipeline_mode = #tpu.pipeline_mode<synchronous>, transform_indices = @transform_7, window_bounds = array<i64: 1, 128>}, {transform_indices = @transform_8, window_bounds = array<i64: 1, 256, 128>}]} {
    %c0_i32 = arith.constant 0 : i32
    %0 = arith.cmpi eq, %arg1, %c0_i32 : i32
    %1 = arith.extui %0 : i1 to i32
    %c0_i32_0 = arith.constant 0 : i32
    %2 = arith.cmpi ne, %1, %c0_i32_0 : i32
    scf.if %2 {
      %c0_23 = arith.constant 0 : index
      %c0_24 = arith.constant 0 : index
      %c0_25 = arith.constant 0 : index
      %37 = vector.load %arg2[%c0_23, %c0_24, %c0_25] : memref<1x256x128xf32, #tpu.memory_space<vmem>>, vector<1x256x128xf32>
      %38 = vector.shape_cast %37 : vector<1x256x128xf32> to vector<256x128xf32>
      %39 = arith.truncf %38 : vector<256x128xf32> to vector<256x128xbf16>
      %c0_26 = arith.constant 0 : index
      %c0_27 = arith.constant 0 : index
      %40 = vector.load %arg4[%c0_26, %c0_27] : memref<128x256xbf16, #tpu.memory_space<vmem>>, vector<128x256xbf16>
      %cst_28 = arith.constant dense<0.000000e+00> : vector<256x256xf32>
      %41 = tpu.matmul %39, %40, %cst_28 {dimension_numbers = #tpu.dot_dimension_numbers<[1], [0], [0], [1], [0, 0, 1, 1], [], []>} : vector<256x128xbf16>, vector<128x256xbf16>, vector<256x256xf32> -> vector<256x256xf32>
      %c0_29 = arith.constant 0 : index
      %c0_30 = arith.constant 0 : index
      %42 = vector.load %arg5[%c0_29, %c0_30] : memref<1x256xf32, #tpu.memory_space<vmem>>, vector<1x256xf32>
      %43 = vector.broadcast %42 : vector<1x256xf32> to vector<256x256xf32>
      %44 = arith.addf %41, %43 : vector<256x256xf32>
      %45 = vector.extract_strided_slice %44 {offsets = [0, 0], sizes = [64, 256], strides = [1, 1]} : vector<256x256xf32> to vector<64x256xf32>
      %46 = vector.extract_strided_slice %44 {offsets = [64, 0], sizes = [64, 256], strides = [1, 1]} : vector<256x256xf32> to vector<64x256xf32>
      %47 = vector.extract_strided_slice %44 {offsets = [128, 0], sizes = [64, 256], strides = [1, 1]} : vector<256x256xf32> to vector<64x256xf32>
      %48 = vector.extract_strided_slice %44 {offsets = [192, 0], sizes = [64, 256], strides = [1, 1]} : vector<256x256xf32> to vector<64x256xf32>
      %49 = arith.maximumf %45, %46 : vector<64x256xf32>
      %50 = arith.maximumf %47, %48 : vector<64x256xf32>
      %51 = arith.maximumf %49, %50 : vector<64x256xf32>
      %52 = vector.extract_strided_slice %51 {offsets = [0, 0], sizes = [64, 128], strides = [1, 1]} : vector<64x256xf32> to vector<64x128xf32>
      %53 = arith.truncf %52 : vector<64x128xf32> to vector<64x128xbf16>
      %c0_31 = arith.constant 0 : index
      %c0_32 = arith.constant 0 : index
      %54 = vector.load %arg11[%c0_31, %c0_32] : memref<64x128xbf16, #tpu.memory_space<vmem>>, vector<64x128xbf16>
      tpu.vector_store %arg11[%c0_31, %c0_32], %53 {strides = array<i32>} : memref<64x128xbf16, #tpu.memory_space<vmem>>, vector<64x128xbf16>,
      %55 = vector.extract_strided_slice %51 {offsets = [0, 128], sizes = [64, 128], strides = [1, 1]} : vector<64x256xf32> to vector<64x128xf32>
      %56 = arith.truncf %55 : vector<64x128xf32> to vector<64x128xbf16>
      %c0_33 = arith.constant 0 : index
      %c0_34 = arith.constant 0 : index
      %57 = vector.load %arg12[%c0_33, %c0_34] : memref<64x128xbf16, #tpu.memory_space<vmem>>, vector<64x128xbf16>
      tpu.vector_store %arg12[%c0_33, %c0_34], %56 {strides = array<i32>} : memref<64x128xbf16, #tpu.memory_space<vmem>>, vector<64x128xbf16>,
    } else {
    }
    %c0 = arith.constant 0 : index
    %c0_1 = arith.constant 0 : index
    %c0_2 = arith.constant 0 : index
    %3 = vector.load %arg3[%c0, %c0_1, %c0_2] : memref<1x256x128xf32, #tpu.memory_space<vmem>>, vector<1x256x128xf32>
    %4 = vector.shape_cast %3 : vector<1x256x128xf32> to vector<256x128xf32>
    %5 = arith.truncf %4 : vector<256x128xf32> to vector<256x128xbf16>
    %c0_3 = arith.constant 0 : index
    %c0_4 = arith.constant 0 : index
    %6 = vector.load %arg6[%c0_3, %c0_4] : memref<128x128xbf16, #tpu.memory_space<vmem>>, vector<128x128xbf16>
    %cst = arith.constant dense<0.000000e+00> : vector<256x128xf32>
    %7 = tpu.matmul %5, %6, %cst {dimension_numbers = #tpu.dot_dimension_numbers<[1], [0], [0], [1], [0, 0, 1, 1], [], []>} : vector<256x128xbf16>, vector<128x128xbf16>, vector<256x128xf32> -> vector<256x128xf32>
    %c0_5 = arith.constant 0 : index
    %c0_6 = arith.constant 0 : index
    %8 = vector.load %arg7[%c0_5, %c0_6] : memref<1x128xf32, #tpu.memory_space<vmem>>, vector<1x128xf32>
    %9 = vector.broadcast %8 : vector<1x128xf32> to vector<256x128xf32>
    %10 = arith.addf %7, %9 : vector<256x128xf32>
    %11 = arith.truncf %10 : vector<256x128xf32> to vector<256x128xbf16>
    %c0_7 = arith.constant 0 : index
    %c0_8 = arith.constant 0 : index
    %12 = vector.load %arg11[%c0_7, %c0_8] : memref<64x128xbf16, #tpu.memory_space<vmem>>, vector<64x128xbf16>
    %cst_9 = arith.constant dense<0.000000e+00> : vector<256x64xf32>
    %13 = tpu.matmul %11, %12, %cst_9 {dimension_numbers = #tpu.dot_dimension_numbers<[1], [1], [0], [0], [0, 0, 1, 0], [], []>} : vector<256x128xbf16>, vector<64x128xbf16>, vector<256x64xf32> -> vector<256x64xf32>
    %cst_10 = arith.constant dense<0xFF800000> : vector<256xf32>
    %14 = vector.multi_reduction <maximumf>, %13, %cst_10 [1] : vector<256x64xf32> to vector<256xf32>
    %15 = vector.shape_cast %14 : vector<256xf32> to vector<256x1xf32>
    %16 = vector.broadcast %15 : vector<256x1xf32> to vector<256x64xf32>
    %17 = arith.subf %13, %16 : vector<256x64xf32>
    %18 = math.exp %17 : vector<256x64xf32>
    %cst_11 = arith.constant dense<0.000000e+00> : vector<256xf32>
    %19 = vector.multi_reduction <add>, %18, %cst_11 [1] : vector<256x64xf32> to vector<256xf32>
    %20 = vector.shape_cast %19 : vector<256xf32> to vector<256x1xf32>
    %21 = tpu.reciprocal %20 {approx = true} : vector<256x1xf32> -> vector<256x1xf32>
    %22 = arith.truncf %18 : vector<256x64xf32> to vector<256x64xbf16>
    %c0_12 = arith.constant 0 : index
    %c0_13 = arith.constant 0 : index
    %23 = vector.load %arg12[%c0_12, %c0_13] : memref<64x128xbf16, #tpu.memory_space<vmem>>, vector<64x128xbf16>
    %cst_14 = arith.constant dense<0.000000e+00> : vector<256x128xf32>
    %24 = tpu.matmul %22, %23, %cst_14 {dimension_numbers = #tpu.dot_dimension_numbers<[1], [0], [0], [1], [0, 0, 1, 1], [], []>} : vector<256x64xbf16>, vector<64x128xbf16>, vector<256x128xf32> -> vector<256x128xf32>
    %25 = vector.broadcast %21 : vector<256x1xf32> to vector<256x128xf32>
    %26 = arith.mulf %24, %25 : vector<256x128xf32>
    %27 = arith.truncf %26 : vector<256x128xf32> to vector<256x128xbf16>
    %c0_15 = arith.constant 0 : index
    %c0_16 = arith.constant 0 : index
    %28 = vector.load %arg8[%c0_15, %c0_16] : memref<128x128xbf16, #tpu.memory_space<vmem>>, vector<128x128xbf16>
    %cst_17 = arith.constant dense<0.000000e+00> : vector<256x128xf32>
    %29 = tpu.matmul %27, %28, %cst_17 {dimension_numbers = #tpu.dot_dimension_numbers<[1], [0], [0], [1], [0, 0, 1, 1], [], []>} : vector<256x128xbf16>, vector<128x128xbf16>, vector<256x128xf32> -> vector<256x128xf32>
    %c0_18 = arith.constant 0 : index
    %c0_19 = arith.constant 0 : index
    %30 = vector.load %arg9[%c0_18, %c0_19] : memref<1x128xf32, #tpu.memory_space<vmem>>, vector<1x128xf32>
    %31 = vector.broadcast %30 : vector<1x128xf32> to vector<256x128xf32>
    %32 = arith.addf %29, %31 : vector<256x128xf32>
    %33 = arith.addf %32, %4 : vector<256x128xf32>
    %c0_20 = arith.constant 0 : index
    %c0_21 = arith.constant 0 : index
    %c0_22 = arith.constant 0 : index
    %34 = vector.load %arg10[%c0_20, %c0_21, %c0_22] : memref<1x256x128xf32, #tpu.memory_space<vmem>>, vector<1x256x128xf32>
    %35 = vector.shape_cast %34 : vector<1x256x128xf32> to vector<256x128xf32>
    %36 = vector.shape_cast %33 : vector<256x128xf32> to vector<1x256x128xf32>
    tpu.vector_store %arg10[%c0_20, %c0_21, %c0_22], %36 {strides = array<i32>} : memref<1x256x128xf32, #tpu.memory_space<vmem>>, vector<1x256x128xf32>,
    return
  }
  func.func @transform_0(%arg0: i32, %arg1: i32) -> (i32, i32, i32) {
    %c0_i32 = arith.constant 0 : i32
    %c0_i32_0 = arith.constant 0 : i32
    %c0_i32_1 = arith.constant 0 : i32
    return %arg0, %c0_i32, %c0_i32_0 : i32, i32, i32
  }
  func.func @transform_1(%arg0: i32, %arg1: i32) -> (i32, i32, i32) {
    %c0_i32 = arith.constant 0 : i32
    %c0_i32_0 = arith.constant 0 : i32
    return %arg0, %arg1, %c0_i32 : i32, i32, i32
  }
  func.func @transform_2(%arg0: i32, %arg1: i32) -> (i32, i32) {
    %c0_i32 = arith.constant 0 : i32
    %c0_i32_0 = arith.constant 0 : i32
    %c0_i32_1 = arith.constant 0 : i32
    return %c0_i32, %c0_i32_0 : i32, i32
  }
  func.func @transform_3(%arg0: i32, %arg1: i32) -> (i32, i32) {
    %c0_i32 = arith.constant 0 : i32
    %c0_i32_0 = arith.constant 0 : i32
    %c0_i32_1 = arith.constant 0 : i32
    return %c0_i32, %c0_i32_0 : i32, i32
  }
  func.func @transform_4(%arg0: i32, %arg1: i32) -> (i32, i32) {
    %c0_i32 = arith.constant 0 : i32
    %c0_i32_0 = arith.constant 0 : i32
    %c0_i32_1 = arith.constant 0 : i32
    return %c0_i32, %c0_i32_0 : i32, i32
  }
  func.func @transform_5(%arg0: i32, %arg1: i32) -> (i32, i32) {
    %c0_i32 = arith.constant 0 : i32
    %c0_i32_0 = arith.constant 0 : i32
    %c0_i32_1 = arith.constant 0 : i32
    return %c0_i32, %c0_i32_0 : i32, i32
  }
  func.func @transform_6(%arg0: i32, %arg1: i32) -> (i32, i32) {
    %c0_i32 = arith.constant 0 : i32
    %c0_i32_0 = arith.constant 0 : i32
    %c0_i32_1 = arith.constant 0 : i32
    return %c0_i32, %c0_i32_0 : i32, i32
  }
  func.func @transform_7(%arg0: i32, %arg1: i32) -> (i32, i32) {
    %c0_i32 = arith.constant 0 : i32
    %c0_i32_0 = arith.constant 0 : i32
    %c0_i32_1 = arith.constant 0 : i32
    return %c0_i32, %c0_i32_0 : i32, i32
  }
  func.func @transform_8(%arg0: i32, %arg1: i32) -> (i32, i32, i32) {
    %c0_i32 = arith.constant 0 : i32
    %c0_i32_0 = arith.constant 0 : i32
    return %arg0, %arg1, %c0_i32 : i32, i32, i32
  }
}

</mosaic_0001>

<bundles_post_ra>
// kernel: nonlocal_block_pallas.1
= control target key start
LH: loop header
LB: loop body
LE: loop exit
PB: predicated region body
PF: predicated region fallthrough
CT: control target
= control target key end

     0   :  { %s3076_s27 = smov 0   ;;  %s3078_s28 = smov 0   ;;  %s3924_s0 = inlined_call_operand.vmem [shape: f32[2,256,128], index: 0, kind: input, shape index: {}]   ;;  %s3925_s1 = inlined_call_operand.vmem [shape: f32[2,256,128], index: 1, kind: input, shape index: {}]   ;;  %s3926_s2 = inlined_call_operand.vmem [shape: bf16[128,256], index: 2, kind: input, shape index: {}]   ;;  %s3927_s3 = inlined_call_operand.vmem [shape: f32[1,256], index: 3, kind: input, shape index: {}]   ;;  %s3928_s4 = inlined_call_operand.vmem [shape: bf16[128,128], index: 4, kind: input, shape index: {}]   ;;  %s3929_s5 = inlined_call_operand.vmem [shape: f32[1,128], index: 5, kind: input, shape index: {}]   ;;  %s3930_s6 = inlined_call_operand.vmem [shape: bf16[128,128], index: 6, kind: input, shape index: {}]   ;;  %s3931_s7 = inlined_call_operand.vmem [shape: f32[1,128], index: 7, kind: input, shape index: {}]   ;;  %s3932_s8 = inlined_call_operand.vmem [shape: f32[2,256,128], index: 8, kind: output, shape index: {}]  }
   0x1   :  { %s3080_s29 = smov 0  }
   0x2 LB: > { %s30_s30 = sadd.s32 1, %s3024_s28  ;;  %p2361_p0 = scmp.ge.s32.totalorder %s3028_s29, 1  ;;  %s3028_s29 = sphi %s3080_s29, %s18_s29   ;;  %s3024_s28 = sphi %s3078_s28, %s3967_s28   ;;  %s3020_s27 = sphi %s3076_s27, %s3966_s27  }
   0x3   : > { %p32_p1 = scmp.ge.s32.totalorder %s30_s30, 2  ;;  %p293_p2 = scmp.lt.s32.totalorder %s3028_s29, 3 }
   0x5   : > { %s3969_s30 = smov (%p32_p1, %s30_s30), 0  ;;  %p294_p3 = pnand %p2361_p0, %p293_p2 }
   0x7   : > { %297 = sbr.rel (%p294_p3) target bundleno = 1237 (0x4d5), region = 52 }
   0xc   : > { %v2798_v0 = vld [vmem:[%s3926_s2 + $0x74] ss:$8 sps:$4 sm:$0xff]   ;;  %v2800_v1 = vld [vmem:[%s3926_s2 + $0x70] ss:$8 sps:$4 sm:$0xff]   ;;  %v3030_v2 = vmov 0   ;;  %p340_p4 = scmp.lt.s32.totalorder %s3020_s27, 1 }
   0xd   : > { %558 = vmatprep.mubr.bf16.mxu0 %v3030_v2  ;;  %526 = vmatprep.subr.bf16.mxu0 %v2798_v0  ;;  %v2801_v3 = vld [vmem:[%s3926_s2 + $0x64] ss:$8 sps:$4 sm:$0xff]   ;;  %v2803_v4 = vld [vmem:[%s3926_s2 + $0x60] ss:$8 sps:$4 sm:$0xff]   ;;  %v2804_v5 = vld [vmem:[%s3926_s2 + $0x54] ss:$8 sps:$4 sm:$0xff]  }
   0xe   : > { %527 = vmatpush1.bf16.msra.mxu0 %v2800_v1  ;;  %v2806_v6 = vld [vmem:[%s3926_s2 + $0x50] ss:$8 sps:$4 sm:$0xff]   ;;  %v2807_v7 = vld [vmem:[%s3926_s2 + $0x44] ss:$8 sps:$4 sm:$0xff]   ;;  %v2809_v8 = vld [vmem:[%s3926_s2 + $0x40] ss:$8 sps:$4 sm:$0xff]  }
   0xf   : > { %528 = vmatprep.subr.bf16.mxu0 %v2801_v3  ;;  %v2810_v9 = vld [vmem:[%s3926_s2 + $0x34] ss:$8 sps:$4 sm:$0xff]   ;;  %v2812_v10 = vld [vmem:[%s3926_s2 + $0x30] ss:$8 sps:$4 sm:$0xff]   ;;  %v2813_v11 = vld [vmem:[%s3926_s2 + $0x24] ss:$8 sps:$4 sm:$0xff]  }
  0x10   : > { %s3971_s27 = smov (!%p340_p4, %s3020_s27), 1  ;;  %v2815_v12 = vld [vmem:[%s3926_s2 + $0x20] ss:$8 sps:$4 sm:$0xff]   ;;  %v2816_v13 = vld [vmem:[%s3926_s2 + $0x14] ss:$8 sps:$4 sm:$0xff]   ;;  %vm1336_vm0 = vcmask 523264  }
  0x11   : > { %s3138_s17 = sshll.u32 %s3971_s27, 8  ;;  %v2818_v14 = vld [vmem:[%s3926_s2 + $0x10] ss:$8 sps:$4 sm:$0xff]   ;;  %v2819_v15 = vld [vmem:[%s3926_s2 + $0x4] ss:$8 sps:$4 sm:$0xff]  }
  0x12   : > { %529 = vmatpush1.bf16.msra.mxu0 %v2803_v4  ;;  %s3150_s24 = scalar_lea.vmem %s3924_s0, %s3138_s17  ;;  %v2822_v16 = vld [vmem:[%s3928_s4 + $0x38] sm:$0xff]   ;;  %v2823_v17 = vld [vmem:[%s3928_s4 + $0x30] sm:$0xff]   ;;  %s3162_s12 = scalar_lea.vmem %s3925_s1, %s3138_s17  ;;  %v2821_v18 = vld [vmem:[%s3926_s2] ss:$8 sps:$4 sm:$0xff]  }
  0x13   : > { %530 = vmatprep.subr.bf16.mxu0 %v2804_v5  ;;  %v370_v19 = vld [vmem:[%s3150_s24] sm:$0xff]  ;;  %v371_v20 = vld [vmem:[%s3150_s24 + $0x8] sm:$0xff]  ;;  %2597 = vmatprep.subr.bf16.mxu1 %v2822_v16  ;;  %v372_v26 = vld [vmem:[%s3150_s24 + $0x10] sm:$0xff]  ;;  %s3818_s18 = scalar_lea.vmem %s3932_s8, %s3138_s17 }
  0x14   : > { %2598 = vmatpush3.bf16.msra.mxu1 %v2822_v16  ;;  %v847_v21 = vld [vmem:[%s3162_s12] sm:$0xff]  ;;  %v848_v22 = vld [vmem:[%s3162_s12 + $0x8] sm:$0xff]  ;;  %v402_v23 = vpack.c.bf16 %v371_v20, %v370_v19  ;;  %v373_v27 = vld [vmem:[%s3150_s24 + $0x18] sm:$0xff] }
  0x15   : > { %2599 = vmatprep.subr.bf16.mxu1 %v2823_v17  ;;  %v2824_v24 = vld [vmem:[%s3928_s4 + $0x28] sm:$0xff]   ;;  %v879_v25 = vpack.c.bf16 %v848_v22, %v847_v21  ;;  %v2825_v28 = vld [vmem:[%s3928_s4 + $0x20] sm:$0xff]   ;;  %v2826_v29 = vld [vmem:[%s3928_s4 + $0x18] sm:$0xff]   ;;  %v403_v30 = vpack.c.bf16 %v373_v27, %v372_v26 }
  0x16   : > { %531 = vmatpush1.bf16.msra.mxu0 %v2806_v6  ;;  %v2827_v31 = vld [vmem:[%s3928_s4 + $0x10] sm:$0xff]   ;;  %v374_v32 = vld [vmem:[%s3150_s24 + $0x20] sm:$0xff]  ;;  %v375_v33 = vld [vmem:[%s3150_s24 + $0x28] sm:$0xff] }
  0x17   : > { %532 = vmatprep.subr.bf16.mxu0 %v2807_v7  ;;  %2613 = vmatprep.mubr.bf16.mxu1 %v879_v25  ;;  %v404_v34 = vpack.c.bf16 %v375_v33, %v374_v32  ;;  %v2828_v35 = vld [vmem:[%s3928_s4 + $0x8] sm:$0xff]   ;;  %v2829_v36 = vld [vmem:[%s3928_s4] sm:$0xff]   ;;  %v376_v37 = vld [vmem:[%s3150_s24 + $0x30] sm:$0xff] }
  0x18   : > { %2600 = vmatpush3.bf16.msra.mxu1 %v2823_v17  ;;  %v377_v38 = vld [vmem:[%s3150_s24 + $0x38] sm:$0xff]  ;;  %v849_v39 = vld [vmem:[%s3162_s12 + $0x10] sm:$0xff]  ;;  %v851_v42 = vld [vmem:[%s3162_s12 + $0x20] sm:$0xff] }
  0x19   : > { %2601 = vmatprep.subr.bf16.mxu1 %v2824_v24  ;;  %v850_v40 = vld [vmem:[%s3162_s12 + $0x18] sm:$0xff]  ;;  %v405_v41 = vpack.c.bf16 %v377_v38, %v376_v37  ;;  %v852_v43 = vld [vmem:[%s3162_s12 + $0x28] sm:$0xff]  ;;  %v378_v46 = vld [vmem:[%s3150_s24 + $0x40] sm:$0xff] }
  0x1a   : > { %533 = vmatpush1.bf16.msra.mxu0 %v2809_v8  ;;  %v880_v44 = vpack.c.bf16 %v850_v40, %v849_v39  ;;  %v881_v45 = vpack.c.bf16 %v852_v43, %v851_v42  ;;  %v379_v47 = vld [vmem:[%s3150_s24 + $0x48] sm:$0xff]  ;;  %v853_v48 = vld [vmem:[%s3162_s12 + $0x30] sm:$0xff]  ;;  %v854_v49 = vld [vmem:[%s3162_s12 + $0x38] sm:$0xff] }
  0x1b   : > { %534 = vmatprep.subr.bf16.mxu0 %v2810_v9  ;;  %v406_v50 = vpack.c.bf16 %v379_v47, %v378_v46  ;;  %v855_v51 = vld [vmem:[%s3162_s12 + $0x40] sm:$0xff]  ;;  %v856_v52 = vld [vmem:[%s3162_s12 + $0x48] sm:$0xff]  ;;  %v882_v53 = vpack.c.bf16 %v854_v49, %v853_v48  ;;  %v380_v55 = vld [vmem:[%s3150_s24 + $0x50] sm:$0xff] }
  0x1c   : > { %2602 = vmatpush3.bf16.msra.mxu1 %v2824_v24  ;;  %v883_v54 = vpack.c.bf16 %v856_v52, %v855_v51  ;;  %v381_v56 = vld [vmem:[%s3150_s24 + $0x58] sm:$0xff]  ;;  %v857_v57 = vld [vmem:[%s3162_s12 + $0x50] sm:$0xff]  ;;  %v859_v60 = vld [vmem:[%s3162_s12 + $0x60] sm:$0xff] }
  0x1d   : > { %2603 = vmatprep.subr.bf16.mxu1 %v2825_v28  ;;  %v858_v58 = vld [vmem:[%s3162_s12 + $0x58] sm:$0xff]  ;;  %v407_v59 = vpack.c.bf16 %v381_v56, %v380_v55  ;;  %v860_v61 = vld [vmem:[%s3162_s12 + $0x68] sm:$0xff]  ;;  %v382_v0 = vld [vmem:[%s3150_s24 + $0x60] sm:$0xff] }
  0x1e   : > { %535 = vmatpush1.bf16.msra.mxu0 %v2812_v10  ;;  %v884_v62 = vpack.c.bf16 %v858_v58, %v857_v57  ;;  %v885_v63 = vpack.c.bf16 %v860_v61, %v859_v60  ;;  %v383_v1 = vld [vmem:[%s3150_s24 + $0x68] sm:$0xff]  ;;  %v861_v3 = vld [vmem:[%s3162_s12 + $0x70] sm:$0xff]  ;;  %v862_v4 = vld [vmem:[%s3162_s12 + $0x78] sm:$0xff] }
  0x1f   : > { %536 = vmatprep.subr.bf16.mxu0 %v2813_v11  ;;  %v408_v5 = vpack.c.bf16 %v383_v1, %v382_v0  ;;  %v886_v6 = vpack.c.bf16 %v862_v4, %v861_v3  ;;  %v384_v7 = vld [vmem:[%s3150_s24 + $0x70] sm:$0xff]  ;;  %v385_v8 = vld [vmem:[%s3150_s24 + $0x78] sm:$0xff]  ;;  %v386_v10 = vld [vmem:[%s3150_s24 + $0x80] sm:$0xff]  ;;  %v436_v3 = vlaneseq }
  0x20   : > { %2604 = vmatpush3.bf16.msra.mxu1 %v2825_v28  ;;  %v409_v9 = vpack.c.bf16 %v385_v8, %v384_v7  ;;  %v863_v11 = vld [vmem:[%s3162_s12 + $0x80] sm:$0xff]  ;;  %v866_v16 = vld [vmem:[%s3162_s12 + $0x98] sm:$0xff]  ;;  %v388_v19 = vld [vmem:[%s3150_s24 + $0x90] sm:$0xff] }
  0x21   : > { %2605 = vmatprep.subr.bf16.mxu1 %v2826_v29  ;;  %v867_v20 = vld [vmem:[%s3162_s12 + $0xa0] sm:$0xff]  ;;  %v868_v21 = vld [vmem:[%s3162_s12 + $0xa8] sm:$0xff]  ;;  %v389_v22 = vld [vmem:[%s3150_s24 + $0x98] sm:$0xff] }
  0x22   : > { %537 = vmatpush1.bf16.msra.mxu0 %v2815_v12  ;;  %v864_v12 = vld [vmem:[%s3162_s12 + $0x88] sm:$0xff]  ;;  %v869_v24 = vld [vmem:[%s3162_s12 + $0xb0] sm:$0xff]  ;;  %v870_v25 = vld [vmem:[%s3162_s12 + $0xb8] sm:$0xff]  ;;  %v411_v27 = vpack.c.bf16 %v389_v22, %v388_v19 }
  0x23   : > { %538 = vmatprep.subr.bf16.mxu0 %v2816_v13  ;;  %v387_v13 = vld [vmem:[%s3150_s24 + $0x88] sm:$0xff]  ;;  %v890_v26 = vpack.c.bf16 %v870_v25, %v869_v24  ;;  %v390_v28 = vld [vmem:[%s3150_s24 + $0xa0] sm:$0xff]  ;;  %v873_v33 = vld [vmem:[%s3162_s12 + $0xd0] sm:$0xff] }
  0x24   : > { %2606 = vmatpush3.bf16.msra.mxu1 %v2826_v29  ;;  %v871_v29 = vld [vmem:[%s3162_s12 + $0xc0] sm:$0xff]  ;;  %v392_v37 = vld [vmem:[%s3150_s24 + $0xb0] sm:$0xff]  ;;  %v876_v39 = vld [vmem:[%s3162_s12 + $0xe8] sm:$0xff] }
  0x25   : > { %2607 = vmatprep.subr.bf16.mxu1 %v2827_v31  ;;  %v875_v38 = vld [vmem:[%s3162_s12 + $0xe0] sm:$0xff]  ;;  %v393_v40 = vld [vmem:[%s3150_s24 + $0xb8] sm:$0xff]  ;;  %v877_v42 = vld [vmem:[%s3162_s12 + $0xf0] sm:$0xff] }
  0x26   : > { %539 = vmatpush1.bf16.msra.mxu0 %v2818_v14  ;;  %v887_v14 = vpack.c.bf16 %v864_v12, %v863_v11  ;;  %v878_v43 = vld [vmem:[%s3162_s12 + $0xf8] sm:$0xff]  ;;  %v394_v46 = vld [vmem:[%s3150_s24 + $0xc0] sm:$0xff]  ;;  %v395_v47 = vld [vmem:[%s3150_s24 + $0xc8] sm:$0xff] }
  0x27   : > { %540 = vmatprep.subr.bf16.mxu0 %v2819_v15  ;;  %v865_v15 = vld [vmem:[%s3162_s12 + $0x90] sm:$0xff]  ;;  %v414_v48 = vpack.c.bf16 %v395_v47, %v394_v46  ;;  %v398_v52 = vld [vmem:[%s3150_s24 + $0xe0] sm:$0xff]  ;;  %v401_v56 = vld [vmem:[%s3150_s24 + $0xf8] sm:$0xff] }
  0x28   : > { %2608 = vmatpush3.bf16.msra.mxu1 %v2827_v31  ;;  %v888_v17 = vpack.c.bf16 %v866_v16, %v865_v15  ;;  %v391_v31 = vld [vmem:[%s3150_s24 + $0xa8] sm:$0xff]  ;;  %v396_v49 = vld [vmem:[%s3150_s24 + $0xd0] sm:$0xff] }
  0x29   : > { %2609 = vmatprep.subr.bf16.mxu1 %v2828_v35  ;;  %v400_v55 = vld [vmem:[%s3150_s24 + $0xf0] sm:$0xff] }
  0x2a   : > { %541 = vmatpush1.bf16.msra.mxu0 %v2821_v18  ;;  %v410_v18 = vpack.c.bf16 %v387_v13, %v386_v10  ;;  %v417_v57 = vpack.c.bf16 %v401_v56, %v400_v55  ;;  %v434_v10 = vld [vmem:[%s3927_s3] sm:$0x3] }
  0x2c   : > { %2610 = vmatpush3.bf16.msra.mxu1 %v2828_v35 }
  0x2d   : > { %559 = vmatmul.mubr.bf16.vlgmr.msra.gmra.mxu0 %v402_v23  ;;  %2611 = vmatprep.subr.bf16.mxu1 %v2829_v36  ;;  %v889_v23 = vpack.c.bf16 %v868_v21, %v867_v20  ;;  %v3289_v21 = vld [vmem:[%s3929_s5] ss:$0 sm:$0xff] }
  0x2e   : > { %568 = vmatprep.mubr.bf16.mxu0 %v3030_v2  ;;  %3939 = vst [vmem:[#allocation4_spill] sm:$0xff] %v3289_v21 }
  0x30   : > { %2612 = vmatpush3.bf16.msra.mxu1 %v2829_v36  ;;  %v412_v36 = vpack.c.bf16 %v391_v31, %v390_v28 }
  0x33   : > { %2614 = vmatmul.mubr.bf16.vlgmr.msra.gmra.mxu1 %v880_v44  ;;  %v894_v44 = vpack.c.bf16 %v878_v43, %v877_v42 }
  0x34   : > { %2617 = vmatprep.mubr.bf16.mxu1 %v881_v45  ;;  %v413_v45 = vpack.c.bf16 %v393_v40, %v392_v37 }
  0x35   : > { %569 = vmatmul.mubr.bf16.gmra.mxu0 %v403_v30  ;;  %v872_v30 = vld [vmem:[%s3162_s12 + $0xc8] sm:$0xff] }
  0x36   : > { %578 = vmatprep.mubr.bf16.mxu0 %v3030_v2  ;;  %v891_v32 = vpack.c.bf16 %v872_v30, %v871_v29 }
  0x3b   : > { %2618 = vmatmul.mubr.bf16.gmra.mxu1 %v882_v53  ;;  %v399_v53 = vld [vmem:[%s3150_s24 + $0xe8] sm:$0xff] }
  0x3c   : > { %2621 = vmatprep.mubr.bf16.mxu1 %v883_v54  ;;  %v416_v54 = vpack.c.bf16 %v399_v53, %v398_v52 }
  0x3d   : > { %579 = vmatmul.mubr.bf16.gmra.mxu0 %v404_v34  ;;  %v874_v34 = vld [vmem:[%s3162_s12 + $0xd8] sm:$0xff] }
  0x3e   : > { %588 = vmatprep.mubr.bf16.mxu0 %v3030_v2  ;;  %v892_v35 = vpack.c.bf16 %v874_v34, %v873_v33 }
  0x43   : > { %2622 = vmatmul.mubr.bf16.gmra.mxu1 %v884_v62 }
  0x44   : > { %2625 = vmatprep.mubr.bf16.mxu1 %v885_v63 }
  0x45   : > { %589 = vmatmul.mubr.bf16.gmra.mxu0 %v405_v41  ;;  %v893_v41 = vpack.c.bf16 %v876_v39, %v875_v38 }
  0x46   : > { %598 = vmatprep.mubr.bf16.mxu0 %v3030_v2 }
  0x4b   : > { %2626 = vmatmul.mubr.bf16.gmra.mxu1 %v886_v6  ;;  %v437_v6 = vshrl.u32 %v436_v3, 7 }
  0x4c   : > { %2629 = vmatprep.mubr.bf16.mxu1 %v887_v14 }
  0x4d   : > { %599 = vmatmul.mubr.bf16.gmra.mxu0 %v406_v50  ;;  %v397_v50 = vld [vmem:[%s3150_s24 + $0xd8] sm:$0xff]  ;;  %v442_v11 = vsub.s32 1, %v437_v6 }
  0x4e   : > { %608 = vmatprep.mubr.bf16.mxu0 %v3030_v2  ;;  %v415_v51 = vpack.c.bf16 %v397_v50, %v396_v49 }
  0x4f   : > { %v3279_v16 = vrot.slane %v434_v10, %v442_v11 }
  0x53   : > { %2630 = vmatmul.mubr.bf16.gmra.mxu1 %v888_v17 }
  0x54   : > { %2633 = vmatprep.mubr.bf16.mxu1 %v889_v23 }
  0x55   : > { %609 = vmatmul.mubr.bf16.gmra.mxu0 %v407_v59 }
  0x56   : > { %618 = vmatprep.mubr.bf16.mxu0 %v3030_v2 }
  0x5b   : > { %2634 = vmatmul.mubr.bf16.gmra.mxu1 %v890_v26 }
  0x5c   : > { %2637 = vmatprep.mubr.bf16.mxu1 %v891_v32 }
  0x5d   : > { %619 = vmatmul.mubr.bf16.gmra.mxu0 %v408_v5 }
  0x5e   : > { %628 = vmatprep.mubr.bf16.mxu0 %v3030_v2 }
  0x63   : > { %2638 = vmatmul.mubr.bf16.gmra.mxu1 %v892_v35 }
  0x64   : > { %2641 = vmatprep.mubr.bf16.mxu1 %v893_v41 }
  0x65   : > { %629 = vmatmul.mubr.bf16.gmra.mxu0 %v409_v9 }
  0x66   : > { %638 = vmatprep.mubr.bf16.mxu0 %v3030_v2 }
  0x6b   : > { %2642 = vmatmul.mubr.bf16.gmra.mxu1 %v894_v44 }
  0x6d   : > { %639 = vmatmul.mubr.bf16.gmra.mxu0 %v410_v18 }
  0x6e   : > { %648 = vmatprep.mubr.bf16.mxu0 %v3030_v2 }
  0x75   : > { %649 = vmatmul.mubr.bf16.gmra.mxu0 %v411_v27 }
  0x76   : > { %658 = vmatprep.mubr.bf16.mxu0 %v3030_v2 }
  0x7d   : > { %659 = vmatmul.mubr.bf16.gmra.mxu0 %v412_v36 }
  0x7e   : > { %668 = vmatprep.mubr.bf16.mxu0 %v3030_v2 }
  0x85   : > { %669 = vmatmul.mubr.bf16.gmra.mxu0 %v413_v45 }
  0x86   : > { %678 = vmatprep.mubr.bf16.mxu0 %v3030_v2 }
  0x8d   : > { %679 = vmatmul.mubr.bf16.gmra.mxu0 %v414_v48 }
  0x8e   : > { %688 = vmatprep.mubr.bf16.mxu0 %v3030_v2 }
  0x95   : > { %689 = vmatmul.mubr.bf16.gmra.mxu0 %v415_v51 }
  0x96   : > { %698 = vmatprep.mubr.bf16.mxu0 %v3030_v2 }
  0x9d   : > { %699 = vmatmul.mubr.bf16.gmra.mxu0 %v416_v54 }
  0x9e   : > { %708 = vmatprep.mubr.bf16.mxu0 %v3030_v2  ;;  %v438_v2 = vsub.s32 0, %v437_v6 }
  0xa0   : > { %v3275_v13 = vrot.slane %v434_v10, %v438_v2 }
  0xa5   : > { %709 = vmatmul.mubr.bf16.gmra.mxu0 %v417_v57 }
  0xed   : > { %v560_v58 = vpop.f32.mrf.mxu0 }
  0xee   : > { %v3284_v19 = vadd.f32 %v560_v58, %v3275_v13 }
  0xef   : > { %v562_v59 = vpop.f32.mrf.mxu0 }
  0xf0   : > { %v3302_v27 = vadd.f32 %v562_v59, %v3279_v16 }
  0xf1   : > { %v564_v60 = vpop.f32.mrf.mxu0 }
  0xf2   : > { %v3313_v35 = vadd.f32 %v564_v60, %v3275_v13 }
  0xf3   : > { %v566_v61 = vpop.f32.mrf.mxu0  ;;  %v2615_v15 = vpop.f32.mrf.mxu1 }
  0xf4   : > { %v3295_v24 = vadd.f32 %v2615_v15, %v3289_v21  ;;  %v3321_v40 = vadd.f32 %v566_v61, %v3279_v16 }
  0xf5   : > { %v570_v62 = vpop.f32.mrf.mxu0  ;;  %v1000_v18 = vpop.f32.mrf.mxu1 }
  0xf6   : > { %3940 = vst [vmem:[#allocation5_spill] sm:$0xff] %v3295_v24  ;;  %v1001_v25 = vadd.f32 %v3289_v21, %v1000_v18  ;;  %v3329_v44 = vadd.f32 %v570_v62, %v3275_v13 }
  0xf7   : > { %v572_v63 = vpop.f32.mrf.mxu0  ;;  %v2616_v22 = vpop.f32.mrf.mxu1 }
  0xf8   : > { %v3299_v26 = vadd.f32 %v2616_v22, %v3289_v21  ;;  %v3337_v48 = vadd.f32 %v572_v63, %v3279_v16 }
  0xf9   : > { %v574_v0 = vpop.f32.mrf.mxu0  ;;  %v1003_v29 = vpop.f32.mrf.mxu1 }
  0xfa   : > { %3941 = vst [vmem:[#allocation6_spill] sm:$0xff] %v3299_v26  ;;  %v1004_v33 = vadd.f32 %v3289_v21, %v1003_v29  ;;  %v3345_v52 = vadd.f32 %v574_v0, %v3275_v13 }
  0xfb   : > { %v576_v1 = vpop.f32.mrf.mxu0 }
  0xfc   : > { %v1127_v38 = vpack.c.bf16 %v1004_v33, %v1001_v25  ;;  %v3353_v56 = vadd.f32 %v576_v1, %v3279_v16 }
  0xfd   : > { %v580_v4 = vpop.f32.mrf.mxu0 }
  0xfe   : > { %2653 = vmatprep.mubr.bf16.mxu1 %v1127_v38  ;;  %v3361_v60 = vadd.f32 %v580_v4, %v3275_v13 }
  0xff   : > { %v582_v5 = vpop.f32.mrf.mxu0 }
 0x100   : > { %v3369_v0 = vadd.f32 %v582_v5, %v3279_v16 }
 0x101   : > { %v3264_v7 = vpop.f32.mrf.mxu0 }
 0x102   : > { %v3378_v4 = vadd.f32 %v3264_v7, %v3275_v13 }
 0x103   : > { %v3266_v8 = vpop.f32.mrf.mxu0 }
 0x104   : > { %v3387_v5 = vadd.f32 %v3266_v8, %v3279_v16 }
 0x105   : > { %v3268_v9 = vpop.f32.mrf.mxu0 }
 0x106   : > { %v3396_v7 = vadd.f32 %v3268_v9, %v3275_v13 }
 0x107   : > { %v3273_v12 = vpop.f32.mrf.mxu0 }
 0x108   : > { %v3405_v8 = vadd.f32 %v3273_v12, %v3279_v16 }
 0x109   : > { %v3277_v14 = vpop.f32.mrf.mxu0 }
 0x10a   : > { %v3414_v9 = vadd.f32 %v3277_v14, %v3275_v13 }
 0x10b   : > { %v3281_v17 = vpop.f32.mrf.mxu0 }
 0x10c   : > { %v3423_v12 = vadd.f32 %v3281_v17, %v3279_v16 }
 0x10d   : > { %v600_v20 = vpop.f32.mrf.mxu0 }
 0x10e   : > { %v3292_v23 = vadd.f32 %v600_v20, %v3275_v13  ;;  %3942 = vst [vmem:[#allocation7_spill] sm:$0xff] %v3423_v12  ;;  %v3450_v12 = vpop.f32.mrf.mxu1 }
 0x10f   : > { %v602_v28 = vpop.f32.mrf.mxu0 }
 0x110   : > { %v3307_v31 = vadd.f32 %v602_v28, %v3279_v16 }
 0x111   : > { %v604_v34 = vpop.f32.mrf.mxu0 }
 0x112   : > { %v3318_v37 = vadd.f32 %v604_v34, %v3275_v13 }
 0x113   : > { %v606_v39 = vpop.f32.mrf.mxu0 }
 0x114   : > { %v3326_v42 = vadd.f32 %v606_v39, %v3279_v16 }
 0x115   : > { %v610_v43 = vpop.f32.mrf.mxu0 }
 0x116   : > { %v3334_v46 = vadd.f32 %v610_v43, %v3275_v13 }
 0x117   : > { %v612_v47 = vpop.f32.mrf.mxu0 }
 0x118   : > { %v3342_v50 = vadd.f32 %v612_v47, %v3279_v16 }
 0x119   : > { %v614_v51 = vpop.f32.mrf.mxu0 }
 0x11a   : > { %v3350_v54 = vadd.f32 %v614_v51, %v3275_v13 }
 0x11b   : > { %v616_v55 = vpop.f32.mrf.mxu0 }
 0x11c   : > { %v3358_v58 = vadd.f32 %v616_v55, %v3279_v16 }
 0x11d   : > { %v620_v59 = vpop.f32.mrf.mxu0 }
 0x11e   : > { %v3366_v62 = vadd.f32 %v620_v59, %v3275_v13 }
 0x11f   : > { %v622_v63 = vpop.f32.mrf.mxu0 }
 0x120   : > { %v3374_v3 = vadd.f32 %v622_v63, %v3279_v16 }
 0x121   : > { %v624_v6 = vpop.f32.mrf.mxu0 }
 0x122   : > { %v3383_v10 = vadd.f32 %v624_v6, %v3275_v13 }
 0x123   : > { %v626_v11 = vpop.f32.mrf.mxu0 }
 0x124   : > { %v3392_v18 = vadd.f32 %v626_v11, %v3279_v16 }
 0x125   : > { %v630_v20 = vpop.f32.mrf.mxu0 }
 0x126   : > { %v3401_v25 = vadd.f32 %v630_v20, %v3275_v13 }
 0x127   : > { %v632_v28 = vpop.f32.mrf.mxu0 }
 0x128   : > { %v3410_v33 = vadd.f32 %v632_v28, %v3279_v16 }
 0x129   : > { %v634_v34 = vpop.f32.mrf.mxu0 }
 0x12a   : > { %v3419_v39 = vadd.f32 %v634_v34, %v3275_v13 }
 0x12b   : > { %v636_v43 = vpop.f32.mrf.mxu0 }
 0x12c   : > { %v3428_v51 = vadd.f32 %v636_v43, %v3279_v16 }
 0x12d   : > { %v640_v55 = vpop.f32.mrf.mxu0 }
 0x12e   : > { %3943 = vst [vmem:[#allocation8_spill] sm:$0xff] %v3428_v51  ;;  %v641_v61 = vadd.f32 %v640_v55, %v3275_v13 }
 0x12f   : > { %v642_v59 = vpop.f32.mrf.mxu0 }
 0x130   : > { %v643_v49 = vadd.f32 %v642_v59, %v3279_v16  ;;  %v3945_v59 = vmax.f32 %v3313_v35, %v3318_v37 }
 0x131   : > { %v644_v63 = vpop.f32.mrf.mxu0 }
 0x132   : > { %v645_v45 = vadd.f32 %v644_v63, %v3275_v13 }
 0x133   : > { %v646_v6 = vpop.f32.mrf.mxu0 }
 0x134   : > { %v647_v24 = vadd.f32 %v646_v6, %v3279_v16 }
 0x135   : > { %v650_v11 = vpop.f32.mrf.mxu0 }
 0x136   : > { %v651_v63 = vadd.f32 %v650_v11, %v3275_v13 }
 0x137   : > { %v652_v20 = vpop.f32.mrf.mxu0 }
 0x138   : > { %v653_v35 = vadd.f32 %v652_v20, %v3279_v16 }
 0x139   : > { %v654_v28 = vpop.f32.mrf.mxu0 }
 0x13b   : > { %v656_v34 = vpop.f32.mrf.mxu0 }
 0x13d   : > { %v660_v32 = vpop.f32.mrf.mxu0 }
 0x13f   : > { %v662_v17 = vpop.f32.mrf.mxu0 }
 0x141   : > { %v664_v38 = vpop.f32.mrf.mxu0 }
 0x143   : > { %v3432_v29 = vpop.f32.mrf.mxu0 }
 0x145   : > { %v3434_v47 = vpop.f32.mrf.mxu0 }
 0x147   : > { %v3436_v43 = vpop.f32.mrf.mxu0 }
 0x149   : > { %v3438_v22 = vpop.f32.mrf.mxu0 }
 0x14b   : > { %v3440_v2 = vpop.f32.mrf.mxu0 }
 0x14d   : > { %v680_v14 = vpop.f32.mrf.mxu0 }
 0x14e   : > { %v681_v15 = vadd.f32 %v680_v14, %v3275_v13 }
 0x14f   : > { %v682_v1 = vpop.f32.mrf.mxu0 }
 0x150   : > { %v683_v53 = vadd.f32 %v682_v1, %v3279_v16  ;;  %v735_v36 = vmax.f32 %v641_v61, %v681_v15  ;;  %v3944_v1 = vmax.f32 %v3284_v19, %v3292_v23 }
 0x151   : > { %v684_v57 = vpop.f32.mrf.mxu0 }
 0x152   : > { %v685_v41 = vadd.f32 %v684_v57, %v3275_v13  ;;  %v736_v26 = vmax.f32 %v643_v49, %v683_v53  ;;  %v751_v55 = vmax.f32 %v3944_v1, %v735_v36  ;;  %v3947_v53 = vmax.f32 %v3321_v40, %v3326_v42 }
 0x153   : > { %v686_v30 = vpop.f32.mrf.mxu0  ;;  %v655_v36 = vadd.f32 %v654_v28, %v3275_v13  ;;  %v3949_v1 = vmax.f32 %v3345_v52, %v3350_v54  ;;  %v663_v52 = vadd.f32 %v662_v17, %v3279_v16 }
 0x154   : > { %v737_v21 = vmax.f32 %v645_v45, %v685_v41  ;;  %v687_v14 = vadd.f32 %v686_v30, %v3279_v16  ;;  %v3946_v30 = vmax.f32 %v3302_v27, %v3307_v31  ;;  %v657_v31 = vadd.f32 %v656_v34, %v3279_v16 }
 0x155   : > { %v690_v51 = vpop.f32.mrf.mxu0  ;;  %v661_v34 = vadd.f32 %v660_v32, %v3275_v13 }
 0x156   : > { %v753_v61 = vmax.f32 %v3945_v59, %v737_v21  ;;  %v738_v15 = vmax.f32 %v647_v24, %v687_v14  ;;  %v691_v57 = vadd.f32 %v690_v51, %v3275_v13  ;;  %v752_v41 = vmax.f32 %v3946_v30, %v736_v26  ;;  %v3468_v24 = vpop.f32.mrf.mxu1 }
 0x157   : > { %v692_v49 = vpop.f32.mrf.mxu0  ;;  %v3948_v14 = vmax.f32 %v3329_v44, %v3334_v46  ;;  %v3951_v30 = vmax.f32 %v3353_v56, %v3358_v58 }
 0x158   : > { %v2466_v45 = vpack.c.bf16 %v753_v61, %v751_v55  ;;  %v754_v19 = vmax.f32 %v3947_v53, %v738_v15  ;;  %v693_v23 = vadd.f32 %v692_v49, %v3279_v16  ;;  %v739_v51 = vmax.f32 %v651_v63, %v691_v57  ;;  %v3474_v20 = vpop.f32.mrf.mxu1 }
 0x159   : > { %v694_v21 = vpop.f32.mrf.mxu0  ;;  %v3950_v57 = vmax.f32 %v3337_v48, %v3342_v50 }
 0x15a   : > { %2467 = vst [vmem:[#allocation2] sm:$0xff] %v2466_v45   ;;  %v2486_v37 = vpack.c.bf16 %v754_v19, %v752_v41  ;;  %v695_v27 = vadd.f32 %v694_v21, %v3275_v13  ;;  %v740_v40 = vmax.f32 %v653_v35, %v693_v23  ;;  %v755_v28 = vmax.f32 %v3948_v14, %v739_v51  ;;  %v3492_v41 = vpop.f32.mrf.mxu1 }
 0x15b   : > { %v696_v26 = vpop.f32.mrf.mxu0  ;;  %v665_v45 = vadd.f32 %v664_v38, %v3275_v13  ;;  %v667_v19 = vadd.f32 %v3432_v29, %v3279_v16  ;;  %v3952_v38 = vmax.f32 %v3361_v60, %v3366_v62  ;;  %v671_v29 = vadd.f32 %v3434_v47, %v3275_v13 }
 0x15c   : > { %2487 = vst [vmem:[#allocation3] sm:$0xff] %v2486_v37   ;;  %v741_v42 = vmax.f32 %v655_v36, %v695_v27  ;;  %v697_v6 = vadd.f32 %v696_v26, %v3279_v16  ;;  %v756_v63 = vmax.f32 %v3950_v57, %v740_v40  ;;  %v3499_v35 = vpop.f32.mrf.mxu1  ;;  %v3953_v36 = vmax.f32 %v3378_v4, %v3383_v10 }
 0x15d   : > { %v700_v11 = vpop.f32.mrf.mxu0  ;;  %v3955_v60 = vmax.f32 %v3387_v5, %v3392_v18  ;;  %v673_v4 = vadd.f32 %v3436_v43, %v3279_v16  ;;  %v675_v47 = vadd.f32 %v3438_v22, %v3275_v13  ;;  %v677_v5 = vadd.f32 %v3440_v2, %v3279_v16 }
 0x15e   : > { %v757_v55 = vmax.f32 %v3949_v1, %v741_v42  ;;  %v742_v59 = vmax.f32 %v657_v31, %v697_v6  ;;  %v701_v61 = vadd.f32 %v700_v11, %v3275_v13  ;;  %v3954_v31 = vmax.f32 %v3369_v0, %v3374_v3  ;;  %v1032_v11 = vpop.f32.mrf.mxu1 }
 0x15f   : > { %v702_v15 = vpop.f32.mrf.mxu0 }
 0x160   : > { %v2471_v49 = vpack.c.bf16 %v757_v55, %v755_v28  ;;  %v758_v44 = vmax.f32 %v3951_v30, %v742_v59  ;;  %v703_v46 = vadd.f32 %v702_v15, %v3279_v16  ;;  %v743_v53 = vmax.f32 %v661_v34, %v701_v61  ;;  %v3525_v43 = vpop.f32.mrf.mxu1 }
 0x161   : > { %v704_v54 = vpop.f32.mrf.mxu0  ;;  %v3956_v59 = vmax.f32 %v3396_v7, %v3401_v25  ;;  %v3957_v61 = vmax.f32 %v3414_v9, %v3419_v39  ;;  %v3958_v15 = vmax.f32 %v3405_v8, %v3410_v33 }
 0x162   : > { %2503 = vst [vmem:[#allocation2 + $0x8] sm:$0xff] %v2471_v49   ;;  %v2491_v32 = vpack.c.bf16 %v758_v44, %v756_v63  ;;  %v705_v48 = vadd.f32 %v704_v54, %v3275_v13  ;;  %v744_v56 = vmax.f32 %v663_v52, %v703_v46  ;;  %v759_v21 = vmax.f32 %v3952_v38, %v743_v53  ;;  %v3959_v63 = vld [vmem:[#allocation7_spill] sm:$0xff]  ;;  %v3960_v49 = vld [vmem:[#allocation8_spill] sm:$0xff]  ;;  %v1035_v44 = vpop.f32.mrf.mxu1 }
 0x163   : > { %v706_v50 = vpop.f32.mrf.mxu0  ;;  %v3961_v30 = vmax.f32 %v3959_v63, %v3960_v49  ;;  %v2836_v53 = vld [vmem:[#allocation3] sm:$0xff]  }
 0x164   : > { %2506 = vst [vmem:[#allocation3 + $0x8] sm:$0xff] %v2491_v32   ;;  %v745_v58 = vmax.f32 %v665_v45, %v705_v48  ;;  %v707_v23 = vadd.f32 %v706_v50, %v3279_v16  ;;  %v760_v40 = vmax.f32 %v3954_v31, %v744_v56  ;;  %v2627_v7 = vpop.f32.mrf.mxu1 }
 0x165   : > { %v710_v17 = vpop.f32.mrf.mxu0 }
 0x166   : > { %v761_v37 = vmax.f32 %v3953_v36, %v745_v58  ;;  %v746_v51 = vmax.f32 %v667_v19, %v707_v23  ;;  %v711_v27 = vadd.f32 %v710_v17, %v3275_v13  ;;  %v1048_v52 = vpop.f32.mrf.mxu1  ;;  %v2837_v19 = vld [vmem:[#allocation2] sm:$0xff]  }
 0x167   : > { %v712_v26 = vpop.f32.mrf.mxu0  ;;  %v3962_v23 = vld [vmem:[#allocation4_spill] sm:$0xff] }
 0x168   : > { %v2476_v42 = vpack.c.bf16 %v761_v37, %v759_v21  ;;  %v762_v62 = vmax.f32 %v3955_v60, %v746_v51  ;;  %v713_v6 = vadd.f32 %v712_v26, %v3279_v16  ;;  %v747_v28 = vmax.f32 %v671_v29, %v711_v27  ;;  %v2628_v33 = vpop.f32.mrf.mxu1  ;;  %v3963_v51 = vld [vmem:[#allocation6_spill] sm:$0xff]  ;;  %v3964_v27 = vld [vmem:[#allocation5_spill] sm:$0xff] }
 0x169   : > { %v714_v10 = vpop.f32.mrf.mxu0  ;;  %v2835_v32 = vld [vmem:[#allocation2 + $0x8] sm:$0xff]   ;;  %v1017_v17 = vadd.f32 %v3962_v23, %v3468_v24  ;;  %v1020_v38 = vadd.f32 %v3962_v23, %v3492_v41  ;;  %v3965_v29 = vpack.c.bf16 %v3963_v51, %v3964_v27  ;;  %v1033_v26 = vadd.f32 %v3962_v23, %v1032_v11 }
 0x16a   : > { %2504 = vst [vmem:[#allocation2 + $0x10] sm:$0xff] %v2476_v42   ;;  %v2496_v14 = vpack.c.bf16 %v762_v62, %v760_v40  ;;  %v715_v0 = vadd.f32 %v714_v10, %v3275_v13  ;;  %v748_v18 = vmax.f32 %v673_v4, %v713_v6  ;;  %v763_v22 = vmax.f32 %v3956_v59, %v747_v28  ;;  %v1051_v45 = vpop.f32.mrf.mxu1 }
 0x16b   : > { %v716_v3 = vpop.f32.mrf.mxu0  ;;  %v2834_v39 = vld [vmem:[#allocation3 + $0x8] sm:$0xff]   ;;  %v1129_v36 = vpack.c.bf16 %v1020_v38, %v1017_v17  ;;  %v1036_v31 = vadd.f32 %v3962_v23, %v1035_v44  ;;  %v1025_v40 = vadd.f32 %v3450_v12, %v3962_v23  ;;  %v1028_v24 = vadd.f32 %v3474_v20, %v3962_v23 }
 0x16c   : > { %2507 = vst [vmem:[#allocation3 + $0x10] sm:$0xff] %v2496_v14   ;;  %v749_v1 = vmax.f32 %v675_v47, %v715_v0  ;;  %v717_v55 = vadd.f32 %v716_v3, %v3279_v16  ;;  %v764_v2 = vmax.f32 %v3958_v15, %v748_v18  ;;  %v2631_v48 = vpop.f32.mrf.mxu1  ;;  %v1049_v6 = vadd.f32 %v3962_v23, %v1048_v52 }
 0x16d   : > { %v1131_v41 = vpack.c.bf16 %v1036_v31, %v1033_v26  ;;  %v1130_v60 = vpack.c.bf16 %v1028_v24, %v1025_v40  ;;  %v1052_v4 = vadd.f32 %v3962_v23, %v1051_v45  ;;  %v1041_v10 = vadd.f32 %v3499_v35, %v3962_v23 }
 0x16e   : > { %v765_v34 = vmax.f32 %v3957_v61, %v749_v1  ;;  %v750_v13 = vmax.f32 %v677_v5, %v717_v55  ;;  %v1064_v50 = vpop.f32.mrf.mxu1  ;;  %v1044_v11 = vadd.f32 %v3525_v43, %v3962_v23  ;;  %v1057_v3 = vadd.f32 %v2627_v7, %v3962_v23 }
 0x16f   : > { %v1133_v47 = vpack.c.bf16 %v1052_v4, %v1049_v6  ;;  %v1065_v28 = vadd.f32 %v3962_v23, %v1064_v50  ;;  %v1060_v5 = vadd.f32 %v2628_v33, %v3962_v23 }
 0x170   : > { %v2481_v57 = vpack.c.bf16 %v765_v34, %v763_v22  ;;  %v766_v16 = vmax.f32 %v3961_v30, %v750_v13  ;;  %v2632_v56 = vpop.f32.mrf.mxu1  ;;  %v1132_v14 = vpack.c.bf16 %v1044_v11, %v1041_v10  ;;  %v1073_v22 = vadd.f32 %v2631_v48, %v3962_v23 }
 0x171   : > { %v2831_v54 = vld [vmem:[#allocation2 + $0x10] sm:$0xff]   ;;  %v1134_v35 = vpack.c.bf16 %v1060_v5, %v1057_v3  ;;  %v1076_v61 = vadd.f32 %v2632_v56, %v3962_v23 }
 0x172   : > { %2505 = vst [vmem:[#allocation2 + $0x18] sm:$0xff] %v2481_v57   ;;  %v2501_v46 = vpack.c.bf16 %v766_v16, %v764_v2  ;;  %v1067_v58 = vpop.f32.mrf.mxu1 }
 0x173   : > { %v2833_v8 = vld [vmem:[#allocation3 + $0x10] sm:$0xff]   ;;  %v1068_v0 = vadd.f32 %v3962_v23, %v1067_v58  ;;  %v1136_v15 = vpack.c.bf16 %v1076_v61, %v1073_v22 }
 0x174   : > { %2508 = vst [vmem:[#allocation3 + $0x18] sm:$0xff] %v2501_v46   ;;  %v2635_v21 = vpop.f32.mrf.mxu1 }
 0x175   : > { %v1135_v1 = vpack.c.bf16 %v1068_v0, %v1065_v28  ;;  %v1089_v49 = vadd.f32 %v2635_v21, %v3962_v23 }
 0x176   : > { %v1080_v37 = vpop.f32.mrf.mxu1 }
 0x177   : > { %v1081_v43 = vadd.f32 %v3962_v23, %v1080_v37 }
 0x178   : > { %v2636_v42 = vpop.f32.mrf.mxu1 }
 0x179   : > { %v2830_v25 = vld [vmem:[#allocation2 + $0x18] sm:$0xff]   ;;  %v1092_v30 = vadd.f32 %v2636_v42, %v3962_v23 }
 0x17a   : > { %2645 = vmatprep.subr.bf16.mxu1 %v2830_v25  ;;  %v1083_v62 = vpop.f32.mrf.mxu1 }
 0x17b   : > { %v2832_v9 = vld [vmem:[#allocation3 + $0x18] sm:$0xff]   ;;  %2646 = vmatpush3.bf16.xpose.msra.mxu1 %v2830_v25  ;;  %v1084_v59 = vadd.f32 %v3962_v23, %v1083_v62  ;;  %v1138_v46 = vpack.c.bf16 %v1092_v30, %v1089_v49 }
 0x17c   : > { %2647 = vmatprep.subr.bf16.mxu1 %v2831_v54  ;;  %2685 = vmatprep.subr.bf16.mxu0 %v2832_v9  ;;  %v2639_v12 = vpop.f32.mrf.mxu1 }
 0x17d   : > { %2686 = vmatpush3.bf16.msra.mxu0 %v2832_v9  ;;  %v1137_v13 = vpack.c.bf16 %v1084_v59, %v1081_v43 }
 0x17e   : > { %2687 = vmatprep.subr.bf16.mxu0 %v2833_v8  ;;  %v1096_v20 = vpop.f32.mrf.mxu1 }
 0x17f   : > { %v1097_v57 = vadd.f32 %v3962_v23, %v1096_v20 }
 0x180   : > { %v2640_v18 = vpop.f32.mrf.mxu1 }
 0x181   : > { %2688 = vmatpush3.bf16.msra.mxu0 %v2833_v8  ;;  %v1108_v9 = vadd.f32 %v2640_v18, %v3962_v23 }
 0x182   : > { %2689 = vmatprep.subr.bf16.mxu0 %v2834_v39  ;;  %v1099_v55 = vpop.f32.mrf.mxu1 }
 0x183   : > { %2648 = vmatpush3.bf16.xpose.msra.mxu1 %v2831_v54  ;;  %v1100_v63 = vadd.f32 %v3962_v23, %v1099_v55  ;;  %v1105_v54 = vadd.f32 %v2639_v12, %v3962_v23 }
 0x184   : > { %2649 = vmatprep.subr.bf16.mxu1 %v2835_v32  ;;  %v2643_v34 = vpop.f32.mrf.mxu1 }
 0x185   : > { %2690 = vmatpush3.bf16.msra.mxu0 %v2834_v39  ;;  %v1139_v44 = vpack.c.bf16 %v1100_v63, %v1097_v57  ;;  %v1140_v33 = vpack.c.bf16 %v1108_v9, %v1105_v54  ;;  %v1121_v39 = vadd.f32 %v2643_v34, %v3962_v23 }
 0x186   : > { %2691 = vmatprep.subr.bf16.mxu0 %v2836_v53  ;;  %v1112_v2 = vpop.f32.mrf.mxu1 }
 0x187   : > { %v1113_v25 = vadd.f32 %v3962_v23, %v1112_v2 }
 0x188   : > { %v2644_v16 = vpop.f32.mrf.mxu1 }
 0x189   : > { %2692 = vmatpush3.bf16.msra.mxu0 %v2836_v53  ;;  %v1124_v45 = vadd.f32 %v2644_v16, %v3962_v23 }
 0x18a   : > { %v1115_v7 = vpop.f32.mrf.mxu1 }
 0x18b   : > { %2650 = vmatpush3.bf16.xpose.msra.mxu1 %v2835_v32  ;;  %v1116_v52 = vadd.f32 %v3962_v23, %v1115_v7  ;;  %v1142_v32 = vpack.c.bf16 %v1124_v45, %v1121_v39 }
 0x18c   : > { %2651 = vmatprep.subr.bf16.mxu1 %v2837_v19 }
 0x18d   : > { %v1141_v8 = vpack.c.bf16 %v1116_v52, %v1113_v25 }
 0x193   : > { %2652 = vmatpush3.bf16.xpose.msra.mxu1 %v2837_v19 }
 0x19a   : > { %2654 = vmatmul.mubr.bf16.vlgmr.msra.gmra.mxu1 %v3965_v29 }
 0x19b   : > { %2657 = vmatprep.mubr.bf16.mxu1 %v1129_v36 }
 0x1a2   : > { %2658 = vmatmul.mubr.bf16.gmra.mxu1 %v1130_v60 }
 0x1a3   : > { %2661 = vmatprep.mubr.bf16.mxu1 %v1131_v41 }
 0x1aa   : > { %2662 = vmatmul.mubr.bf16.gmra.mxu1 %v1132_v14 }
 0x1ab   : > { %2665 = vmatprep.mubr.bf16.mxu1 %v1133_v47 }
 0x1b2   : > { %2666 = vmatmul.mubr.bf16.gmra.mxu1 %v1134_v35 }
 0x1b3   : > { %2669 = vmatprep.mubr.bf16.mxu1 %v1135_v1 }
 0x1ba   : > { %2670 = vmatmul.mubr.bf16.gmra.mxu1 %v1136_v15 }
 0x1bb   : > { %2673 = vmatprep.mubr.bf16.mxu1 %v1137_v13 }
 0x1c2   : > { %2674 = vmatmul.mubr.bf16.gmra.mxu1 %v1138_v46 }
 0x1c3   : > { %2677 = vmatprep.mubr.bf16.mxu1 %v1139_v44 }
 0x1ca   : > { %2678 = vmatmul.mubr.bf16.gmra.mxu1 %v1140_v33 }
 0x1cb   : > { %2681 = vmatprep.mubr.bf16.mxu1 %v1141_v8 }
 0x1d2   : > { %2682 = vmatmul.mubr.bf16.gmra.mxu1 %v1142_v32 }
 0x25a   : > { %v3576_v53 = vpop.f32.mrf.mxu1 }
 0x25b   : > { %v1343_v48 = vsel %vm1336_vm0, %v3576_v53, -inf }
 0x25c   : > { %1344 = vmax.xlane.f32.xlu1 %v1343_v48  ;;  %v3580_v50 = vpop.f32.mrf.mxu1 }
 0x25d   : > { %v1337_v19 = vsel %vm1336_vm0, %v3580_v50, -inf }
 0x25e   : > { %1338 = vmax.xlane.f32.xlu0 %v1337_v19  ;;  %v3584_v56 = vpop.f32.mrf.mxu1 }
 0x25f   : > { %v1346_v58 = vsel %vm1336_vm0, %v3584_v56, -inf }
 0x260   : > { %1347 = vmax.xlane.f32.xlu1 %v1346_v58  ;;  %v3588_v23 = vpop.f32.mrf.mxu1 }
 0x261   : > { %v1340_v17 = vsel %vm1336_vm0, %v3588_v23, -inf }
 0x262   : > { %1341 = vmax.xlane.f32.xlu0 %v1340_v17  ;;  %v3592_v38 = vpop.f32.mrf.mxu1 }
 0x263   : > { %v1355_v27 = vsel %vm1336_vm0, %v3592_v38, -inf }
 0x264   : > { %v3594_v21 = vpop.f32.mrf.mxu1 }
 0x265   : > { %v1349_v36 = vsel %vm1336_vm0, %v3594_v21, -inf }
 0x266   : > { %1350 = vmax.xlane.f32.xlu0 %v1349_v36  ;;  %v3598_v37 = vpop.f32.mrf.mxu1 }
 0x267   : > { %v1358_v40 = vsel %vm1336_vm0, %v3598_v37, -inf }
 0x268   : > { %v3600_v51 = vpop.f32.mrf.mxu1 }
 0x269   : > { %v1352_v29 = vsel %vm1336_vm0, %v3600_v51, -inf }
 0x26a   : > { %1356 = vmax.xlane.f32.xlu0 %v1355_v27  ;;  %1353 = vmax.xlane.f32.xlu1 %v1352_v29  ;;  %v3606_v26 = vpop.f32.mrf.mxu1 }
 0x26b   : > { %v1367_v60 = vsel %vm1336_vm0, %v3606_v26, -inf }
 0x26c   : > { %v3608_v31 = vpop.f32.mrf.mxu1 }
 0x26d   : > { %v1361_v24 = vsel %vm1336_vm0, %v3608_v31, -inf }
 0x26e   : > { %1359 = vmax.xlane.f32.xlu1 %v1358_v40  ;;  %1362 = vmax.xlane.f32.xlu0 %v1361_v24  ;;  %v3614_v42 = vpop.f32.mrf.mxu1 }
 0x26f   : > { %v1370_v10 = vsel %vm1336_vm0, %v3614_v42, -inf }
 0x270   : > { %v3616_v41 = vpop.f32.mrf.mxu1 }
 0x271   : > { %v1364_v62 = vsel %vm1336_vm0, %v3616_v41, -inf }
 0x272   : > { %1368 = vmax.xlane.f32.xlu0 %v1367_v60  ;;  %1365 = vmax.xlane.f32.xlu1 %v1364_v62  ;;  %v3622_v6 = vpop.f32.mrf.mxu1 }
 0x273   : > { %v1379_v14 = vsel %vm1336_vm0, %v3622_v6, -inf }
 0x274   : > { %v3624_v4 = vpop.f32.mrf.mxu1 }
 0x275   : > { %v1373_v11 = vsel %vm1336_vm0, %v3624_v4, -inf }
 0x276   : > { %1371 = vmax.xlane.f32.xlu1 %v1370_v10  ;;  %1374 = vmax.xlane.f32.xlu0 %v1373_v11  ;;  %v3630_v12 = vpop.f32.mrf.mxu1 }
 0x277   : > { %v1382_v3 = vsel %vm1336_vm0, %v3630_v12, -inf }
 0x278   : > { %v3632_v47 = vpop.f32.mrf.mxu1 }
 0x279   : > { %v1376_v20 = vsel %vm1336_vm0, %v3632_v47, -inf }
 0x27a   : > { %1380 = vmax.xlane.f32.xlu0 %v1379_v14  ;;  %1377 = vmax.xlane.f32.xlu1 %v1376_v20  ;;  %v3638_v28 = vpop.f32.mrf.mxu1 }
 0x27b   : > { %v1391_v35 = vsel %vm1336_vm0, %v3638_v28, -inf }
 0x27c   : > { %v3640_v0 = vpop.f32.mrf.mxu1 }
 0x27d   : > { %v1385_v5 = vsel %vm1336_vm0, %v3640_v0, -inf }
 0x27e   : > { %1383 = vmax.xlane.f32.xlu1 %v1382_v3  ;;  %1386 = vmax.xlane.f32.xlu0 %v1385_v5  ;;  %v3646_v18 = vpop.f32.mrf.mxu1 }
 0x27f   : > { %v1394_v22 = vsel %vm1336_vm0, %v3646_v18, -inf }
 0x280   : > { %v3648_v1 = vpop.f32.mrf.mxu1 }
 0x281   : > { %v1388_v55 = vsel %vm1336_vm0, %v3648_v1, -inf }
 0x282   : > { %1392 = vmax.xlane.f32.xlu0 %v1391_v35  ;;  %1389 = vmax.xlane.f32.xlu1 %v1388_v55  ;;  %v3654_v43 = vpop.f32.mrf.mxu1 }
 0x283   : > { %v1403_v15 = vsel %vm1336_vm0, %v3654_v43, -inf }
 0x284   : > { %v3656_v59 = vpop.f32.mrf.mxu1 }
 0x285   : > { %v1397_v61 = vsel %vm1336_vm0, %v3656_v59, -inf }
 0x286   : > { %1395 = vmax.xlane.f32.xlu1 %v1394_v22  ;;  %1398 = vmax.xlane.f32.xlu0 %v1397_v61  ;;  %v3662_v34 = vpop.f32.mrf.mxu1 }
 0x287   : > { %v1406_v49 = vsel %vm1336_vm0, %v3662_v34, -inf }
 0x288   : > { %v3664_v13 = vpop.f32.mrf.mxu1 }
 0x289   : > { %v1400_v2 = vsel %vm1336_vm0, %v3664_v13, -inf }
 0x28a   : > { %1404 = vmax.xlane.f32.xlu0 %v1403_v15  ;;  %1401 = vmax.xlane.f32.xlu1 %v1400_v2  ;;  %v3670_v57 = vpop.f32.mrf.mxu1 }
 0x28b   : > { %v1415_v46 = vsel %vm1336_vm0, %v3670_v57, -inf }
 0x28c   : > { %v3672_v63 = vpop.f32.mrf.mxu1 }
 0x28d   : > { %v1409_v30 = vsel %vm1336_vm0, %v3672_v63, -inf }
 0x28e   : > { %1407 = vmax.xlane.f32.xlu1 %v1406_v49  ;;  %1410 = vmax.xlane.f32.xlu0 %v1409_v30  ;;  %v3678_v16 = vpop.f32.mrf.mxu1 }
 0x28f   : > { %v1418_v54 = vsel %vm1336_vm0, %v3678_v16, -inf }
 0x290   : > { %v3680_v44 = vpop.f32.mrf.mxu1 }
 0x291   : > { %v1412_v7 = vsel %vm1336_vm0, %v3680_v44, -inf }
 0x292   : > { %1416 = vmax.xlane.f32.xlu0 %v1415_v46  ;;  %1413 = vmax.xlane.f32.xlu1 %v1412_v7  ;;  %v3686_v25 = vpop.f32.mrf.mxu1 }
 0x293   : > { %v1427_v39 = vsel %vm1336_vm0, %v3686_v25, -inf }
 0x294   : > { %v3688_v52 = vpop.f32.mrf.mxu1 }
 0x295   : > { %v1421_v9 = vsel %vm1336_vm0, %v3688_v52, -inf }
 0x296   : > { %1419 = vmax.xlane.f32.xlu1 %v1418_v54  ;;  %1422 = vmax.xlane.f32.xlu0 %v1421_v9  ;;  %v3694_v8 = vpop.f32.mrf.mxu1 }
 0x297   : > { %v1430_v32 = vsel %vm1336_vm0, %v3694_v8, -inf }
 0x298   : > { %v3696_v33 = vpop.f32.mrf.mxu1 }
 0x299   : > { %v1424_v45 = vsel %vm1336_vm0, %v3696_v33, -inf }
 0x29a   : > { %1428 = vmax.xlane.f32.xlu0 %v1427_v39  ;;  %1425 = vmax.xlane.f32.xlu1 %v1424_v45 }
 0x29e   : > { %1431 = vmax.xlane.f32.xlu1 %v1430_v32 }
 0x2e5   : > { %v1345_v48 = vpop.xlane.xlu1 %1344 }
 0x2e6   : > { %v1435_v19 = vsub.f32 %v3576_v53, %v1345_v48 }
 0x2e7   : > { %v1339_v58 = vpop.xlane.xlu0 %1338 }
 0x2e8   : > { %v1433_v17 = vsub.f32 %v3580_v50, %v1339_v58  ;;  %v1469_v36 = vmul.f32 1.442695, %v1435_v19 }
 0x2e9   : > { %v1348_v27 = vpop.xlane.xlu1 %1347 }
 0x2ea   : > { %v1465_v29 = vmul.f32 1.442695, %v1433_v17  ;;  %v1436_v40 = vsub.f32 %v3584_v56, %v1348_v27 }
 0x2eb   : > { %v1342_v24 = vpop.xlane.xlu0 %1341 }
 0x2ec   : > { %2846 = vpow2.f32 %v1465_v29  ;;  %v1471_v60 = vmul.f32 1.442695, %v1436_v40  ;;  %v1434_v62 = vsub.f32 %v3588_v23, %v1342_v24 }
 0x2ed   : > { %2848 = vpow2.f32 %v1469_v36 }
 0x2ee   : > { %v1467_v10 = vmul.f32 1.442695, %v1434_v62  ;;  %2850 = vpow2.f32 %v1471_v60 }
 0x2ef   : > { %v1351_v11 = vpop.xlane.xlu0 %1350 }
 0x2f0   : > { %2852 = vpow2.f32 %v1467_v10  ;;  %v1437_v53 = vsub.f32 %v3594_v21, %v1351_v11 }
 0x2f2   : > { %v1473_v14 = vmul.f32 1.442695, %v1437_v53 }
 0x2f3   : > { %v1357_v20 = vpop.xlane.xlu0 %1356  ;;  %v1354_v50 = vpop.xlane.xlu1 %1353 }
 0x2f4   : > { %2854 = vpow2.f32 %v1473_v14  ;;  %v1439_v3 = vsub.f32 %v3592_v38, %v1357_v20  ;;  %v1438_v56 = vsub.f32 %v3600_v51, %v1354_v50 }
 0x2f6   : > { %v1477_v5 = vmul.f32 1.442695, %v1439_v3  ;;  %v1475_v35 = vmul.f32 1.442695, %v1438_v56 }
 0x2f7   : > { %v1360_v55 = vpop.xlane.xlu1 %1359  ;;  %v1363_v22 = vpop.xlane.xlu0 %1362 }
 0x2f8   : > { %2856 = vpow2.f32 %v1477_v5  ;;  %v1440_v23 = vsub.f32 %v3598_v37, %v1360_v55  ;;  %v1441_v61 = vsub.f32 %v3608_v31, %v1363_v22 }
 0x2f9   : > { %v2847_v15 = vpop.eup %2846  ;;  %2858 = vpow2.f32 %v1475_v35 }
 0x2fa   : > { %v2849_v21 = vpop.eup %2848  ;;  %v1479_v2 = vmul.f32 1.442695, %v1440_v23  ;;  %v1481_v49 = vmul.f32 1.442695, %v1441_v61  ;;  %v1529_v30 = vsel %vm1336_vm0, %v2847_v15, 0.0 }
 0x2fb   : > { %v1369_v46 = vpop.xlane.xlu0 %1368  ;;  %v1366_v38 = vpop.xlane.xlu1 %1365  ;;  %1530 = vadd.xlane.f32.xlu0 %v1529_v30  ;;  %v1535_v37 = vsel %vm1336_vm0, %v2849_v21, 0.0 }
 0x2fc   : > { %v2851_v51 = vpop.eup %2850  ;;  %2860 = vpow2.f32 %v1479_v2  ;;  %v1443_v7 = vsub.f32 %v3606_v26, %v1369_v46  ;;  %v1442_v54 = vsub.f32 %v3616_v41, %v1366_v38 }
 0x2fd   : > { %v2853_v9 = vpop.eup %2852  ;;  %2862 = vpow2.f32 %v1481_v49  ;;  %v1658_v48 = vpack.c.bf16 %v2851_v51, %v2849_v21  ;;  %v1538_v40 = vsel %vm1336_vm0, %v2851_v51, 0.0 }
 0x2fe   : > { %v1485_v31 = vmul.f32 1.442695, %v1443_v7  ;;  %v1483_v39 = vmul.f32 1.442695, %v1442_v54  ;;  %v1532_v45 = vsel %vm1336_vm0, %v2853_v9, 0.0  ;;  %v1657_v32 = vpack.c.bf16 %v2853_v9, %v2847_v15 }
 0x2ff   : > { %v1372_v19 = vpop.xlane.xlu1 %1371  ;;  %v1375_v58 = vpop.xlane.xlu0 %1374  ;;  %1536 = vadd.xlane.f32.xlu0 %v1535_v37  ;;  %1533 = vadd.xlane.f32.xlu1 %v1532_v45 }
 0x300   : > { %2864 = vpow2.f32 %v1485_v31  ;;  %v1444_v17 = vsub.f32 %v3614_v42, %v1372_v19  ;;  %v1445_v26 = vsub.f32 %v3624_v4, %v1375_v58  ;;  %2693 = vmatprep.mubr.msk.bf16.mxu0 %vm1336_vm0, %v1657_v32 }
 0x301   : > { %v2855_v41 = vpop.eup %2854  ;;  %2866 = vpow2.f32 %v1483_v39  ;;  %2694 = vmatmul.mubr.msk.bf16.vlgmr.msra.gmra.mxu0 %vm1336_vm0, %v1658_v48 }
 0x302   : > { %v1487_v36 = vmul.f32 1.442695, %v1444_v17  ;;  %v1489_v27 = vmul.f32 1.442695, %v1445_v26  ;;  %v1541_v29 = vsel %vm1336_vm0, %v2855_v41, 0.0 }
 0x303   : > { %v1381_v24 = vpop.xlane.xlu0 %1380  ;;  %v1378_v60 = vpop.xlane.xlu1 %1377  ;;  %1542 = vadd.xlane.f32.xlu0 %v1541_v29  ;;  %1539 = vadd.xlane.f32.xlu1 %v1538_v40 }
 0x304   : > { %2868 = vpow2.f32 %v1487_v36  ;;  %v1447_v42 = vsub.f32 %v3622_v6, %v1381_v24  ;;  %v1446_v4 = vsub.f32 %v3632_v47, %v1378_v60 }
 0x305   : > { %v2857_v62 = vpop.eup %2856  ;;  %2870 = vpow2.f32 %v1489_v27 }
 0x306   : > { %v2859_v10 = vpop.eup %2858  ;;  %v1493_v11 = vmul.f32 1.442695, %v1447_v42  ;;  %v1491_v53 = vmul.f32 1.442695, %v1446_v4  ;;  %v1547_v14 = vsel %vm1336_vm0, %v2857_v62, 0.0 }
 0x307   : > { %v1384_v20 = vpop.xlane.xlu1 %1383  ;;  %v1387_v50 = vpop.xlane.xlu0 %1386  ;;  %1548 = vadd.xlane.f32.xlu0 %v1547_v14  ;;  %v1544_v3 = vsel %vm1336_vm0, %v2859_v10, 0.0  ;;  %v1659_v56 = vpack.c.bf16 %v2859_v10, %v2855_v41 }
 0x308   : > { %2872 = vpow2.f32 %v1493_v11  ;;  %v1448_v5 = vsub.f32 %v3630_v12, %v1384_v20  ;;  %v1449_v6 = vsub.f32 %v3640_v0, %v1387_v50  ;;  %1545 = vadd.xlane.f32.xlu1 %v1544_v3 }
 0x309   : > { %v2861_v47 = vpop.eup %2860  ;;  %2874 = vpow2.f32 %v1491_v53  ;;  %2697 = vmatprep.mubr.msk.bf16.mxu0 %vm1336_vm0, %v1659_v56 }
 0x30a   : > { %v2863_v35 = vpop.eup %2862  ;;  %v1495_v55 = vmul.f32 1.442695, %v1448_v5  ;;  %v1497_v22 = vmul.f32 1.442695, %v1449_v6  ;;  %v1550_v23 = vsel %vm1336_vm0, %v2861_v47, 0.0  ;;  %v1660_v61 = vpack.c.bf16 %v2861_v47, %v2857_v62 }
 0x30b   : > { %v1393_v15 = vpop.xlane.xlu0 %1392  ;;  %v1390_v21 = vpop.xlane.xlu1 %1389  ;;  %v1553_v2 = vsel %vm1336_vm0, %v2863_v35, 0.0 }
 0x30c   : > { %2876 = vpow2.f32 %v1495_v55  ;;  %v1451_v12 = vsub.f32 %v3638_v28, %v1393_v15  ;;  %v1450_v0 = vsub.f32 %v3648_v1, %v1390_v21  ;;  %1554 = vadd.xlane.f32.xlu0 %v1553_v2  ;;  %1551 = vadd.xlane.f32.xlu1 %v1550_v23 }
 0x30d   : > { %v2865_v49 = vpop.eup %2864  ;;  %2878 = vpow2.f32 %v1497_v22  ;;  %2698 = vmatmul.mubr.msk.bf16.gmra.mxu0 %vm1336_vm0, %v1660_v61 }
 0x30e   : > { %v2867_v30 = vpop.eup %2866  ;;  %v1501_v46 = vmul.f32 1.442695, %v1451_v12  ;;  %v1499_v38 = vmul.f32 1.442695, %v1450_v0  ;;  %v1559_v51 = vsel %vm1336_vm0, %v2865_v49, 0.0 }
 0x30f   : > { %v1396_v7 = vpop.xlane.xlu1 %1395  ;;  %v1399_v54 = vpop.xlane.xlu0 %1398  ;;  %v1556_v9 = vsel %vm1336_vm0, %v2867_v30, 0.0  ;;  %v1661_v37 = vpack.c.bf16 %v2867_v30, %v2863_v35 }
 0x310   : > { %2880 = vpow2.f32 %v1501_v46  ;;  %v1452_v28 = vsub.f32 %v3646_v18, %v1396_v7  ;;  %v1453_v1 = vsub.f32 %v3656_v59, %v1399_v54  ;;  %1560 = vadd.xlane.f32.xlu0 %v1559_v51  ;;  %1557 = vadd.xlane.f32.xlu1 %v1556_v9 }
 0x311   : > { %v2869_v31 = vpop.eup %2868  ;;  %2882 = vpow2.f32 %v1499_v38  ;;  %2701 = vmatprep.mubr.msk.bf16.mxu0 %vm1336_vm0, %v1661_v37 }
 0x312   : > { %v2871_v39 = vpop.eup %2870  ;;  %v1503_v45 = vmul.f32 1.442695, %v1452_v28  ;;  %v1505_v32 = vmul.f32 1.442695, %v1453_v1  ;;  %v1562_v48 = vsel %vm1336_vm0, %v2869_v31, 0.0  ;;  %v1662_v19 = vpack.c.bf16 %v2869_v31, %v2865_v49 }
 0x313   : > { %v1405_v58 = vpop.xlane.xlu0 %1404  ;;  %v1402_v17 = vpop.xlane.xlu1 %1401  ;;  %v1565_v26 = vsel %vm1336_vm0, %v2871_v39, 0.0 }
 0x314   : > { %2884 = vpow2.f32 %v1503_v45  ;;  %v1455_v18 = vsub.f32 %v3654_v43, %v1405_v58  ;;  %v1454_v59 = vsub.f32 %v3664_v13, %v1402_v17  ;;  %1566 = vadd.xlane.f32.xlu0 %v1565_v26  ;;  %1563 = vadd.xlane.f32.xlu1 %v1562_v48 }
 0x315   : > { %v2873_v41 = vpop.eup %2872  ;;  %2886 = vpow2.f32 %v1505_v32  ;;  %2702 = vmatmul.mubr.msk.bf16.gmra.mxu0 %vm1336_vm0, %v1662_v19 }
 0x316   : > { %v2875_v36 = vpop.eup %2874  ;;  %v1509_v27 = vmul.f32 1.442695, %v1455_v18  ;;  %v1507_v29 = vmul.f32 1.442695, %v1454_v59  ;;  %v1571_v40 = vsel %vm1336_vm0, %v2873_v41, 0.0 }
 0x317   : > { %v1408_v24 = vpop.xlane.xlu1 %1407  ;;  %v1411_v60 = vpop.xlane.xlu0 %1410  ;;  %v1568_v42 = vsel %vm1336_vm0, %v2875_v36, 0.0  ;;  %v1663_v4 = vpack.c.bf16 %v2875_v36, %v2871_v39 }
 0x318   : > { %2888 = vpow2.f32 %v1509_v27  ;;  %v1456_v43 = vsub.f32 %v3662_v34, %v1408_v24  ;;  %v1457_v13 = vsub.f32 %v3672_v63, %v1411_v60  ;;  %1572 = vadd.xlane.f32.xlu0 %v1571_v40  ;;  %1569 = vadd.xlane.f32.xlu1 %v1568_v42  ;;  %v2839_v27 = vld [vmem:[%s3930_s6 + $0x30] sm:$0xff]  }
 0x319   : > { %v2877_v62 = vpop.eup %2876  ;;  %2890 = vpow2.f32 %v1507_v29  ;;  %2705 = vmatprep.mubr.msk.bf16.mxu0 %vm1336_vm0, %v1663_v4  ;;  %v2840_v4 = vld [vmem:[%s3930_s6 + $0x28] sm:$0xff]  }
 0x31a   : > { %v2879_v10 = vpop.eup %2878  ;;  %v1511_v11 = vmul.f32 1.442695, %v1456_v43  ;;  %v1513_v53 = vmul.f32 1.442695, %v1457_v13  ;;  %v1574_v14 = vsel %vm1336_vm0, %v2877_v62, 0.0  ;;  %v1664_v20 = vpack.c.bf16 %v2877_v62, %v2873_v41 }
 0x31b   : > { %v1417_v50 = vpop.xlane.xlu0 %1416  ;;  %v1414_v3 = vpop.xlane.xlu1 %1413  ;;  %v1577_v56 = vsel %vm1336_vm0, %v2879_v10, 0.0 }
 0x31c   : > { %2892 = vpow2.f32 %v1511_v11  ;;  %v1459_v34 = vsub.f32 %v3670_v57, %v1417_v50  ;;  %v1458_v63 = vsub.f32 %v3680_v44, %v1414_v3  ;;  %1578 = vadd.xlane.f32.xlu0 %v1577_v56  ;;  %1575 = vadd.xlane.f32.xlu1 %v1574_v14  ;;  %v2842_v50 = vld [vmem:[%s3930_s6 + $0x18] sm:$0xff]   ;;  %v2843_v3 = vld [vmem:[%s3930_s6 + $0x10] sm:$0xff]   ;;  %v2844_v56 = vld [vmem:[%s3930_s6 + $0x8] sm:$0xff]  }
 0x31d   : > { %v2881_v5 = vpop.eup %2880  ;;  %2894 = vpow2.f32 %v1513_v53  ;;  %2706 = vmatmul.mubr.msk.bf16.gmra.mxu0 %vm1336_vm0, %v1664_v20  ;;  %v2841_v53 = vld [vmem:[%s3930_s6 + $0x20] sm:$0xff]  }
 0x31e   : > { %v2883_v6 = vpop.eup %2882  ;;  %v1517_v47 = vmul.f32 1.442695, %v1459_v34  ;;  %v1515_v35 = vmul.f32 1.442695, %v1458_v63  ;;  %v1583_v55 = vsel %vm1336_vm0, %v2881_v5, 0.0  ;;  %v2845_v34 = vld [vmem:[%s3930_s6] sm:$0xff]  }
 0x31f   : > { %v1420_v22 = vpop.xlane.xlu1 %1419  ;;  %v1423_v23 = vpop.xlane.xlu0 %1422  ;;  %v1580_v61 = vsel %vm1336_vm0, %v2883_v6, 0.0  ;;  %v1665_v15 = vpack.c.bf16 %v2883_v6, %v2879_v10 }
 0x320   : > { %2896 = vpow2.f32 %v1517_v47  ;;  %v1460_v57 = vsub.f32 %v3678_v16, %v1420_v22  ;;  %1584 = vadd.xlane.f32.xlu0 %v1583_v55  ;;  %v1461_v44 = vsub.f32 %v3688_v52, %v1423_v23  ;;  %1581 = vadd.xlane.f32.xlu1 %v1580_v61 }
 0x321   : > { %v2885_v21 = vpop.eup %2884  ;;  %2898 = vpow2.f32 %v1515_v35  ;;  %2709 = vmatprep.mubr.msk.bf16.mxu0 %vm1336_vm0, %v1665_v15 }
 0x322   : > { %v2887_v2 = vpop.eup %2886  ;;  %v1519_v12 = vmul.f32 1.442695, %v1460_v57  ;;  %v1521_v0 = vmul.f32 1.442695, %v1461_v44  ;;  %v1586_v49 = vsel %vm1336_vm0, %v2885_v21, 0.0  ;;  %v1666_v30 = vpack.c.bf16 %v2885_v21, %v2881_v5 }
 0x323   : > { %v1589_v46 = vsel %vm1336_vm0, %v2887_v2, 0.0  ;;  %v1429_v38 = vpop.xlane.xlu0 %1428  ;;  %v1426_v51 = vpop.xlane.xlu1 %1425 }
 0x324   : > { %2900 = vpow2.f32 %v1519_v12  ;;  %1590 = vadd.xlane.f32.xlu0 %v1589_v46  ;;  %v1463_v16 = vsub.f32 %v3686_v25, %v1429_v38  ;;  %1587 = vadd.xlane.f32.xlu1 %v1586_v49  ;;  %v1462_v52 = vsub.f32 %v3696_v33, %v1426_v51 }
 0x325   : > { %v2889_v7 = vpop.eup %2888  ;;  %2902 = vpow2.f32 %v1521_v0  ;;  %2710 = vmatmul.mubr.msk.bf16.gmra.mxu0 %vm1336_vm0, %v1666_v30 }
 0x326   : > { %v2891_v54 = vpop.eup %2890  ;;  %v1525_v9 = vmul.f32 1.442695, %v1463_v16  ;;  %v1523_v37 = vmul.f32 1.442695, %v1462_v52  ;;  %v1595_v28 = vsel %vm1336_vm0, %v2889_v7, 0.0 }
 0x327   : > { %v1592_v1 = vsel %vm1336_vm0, %v2891_v54, 0.0  ;;  %v1432_v31 = vpop.xlane.xlu1 %1431  ;;  %v1667_v39 = vpack.c.bf16 %v2891_v54, %v2887_v2 }
 0x328   : > { %2904 = vpow2.f32 %v1525_v9  ;;  %1596 = vadd.xlane.f32.xlu0 %v1595_v28  ;;  %1593 = vadd.xlane.f32.xlu1 %v1592_v1  ;;  %v1464_v25 = vsub.f32 %v3694_v8, %v1432_v31  ;;  %v2838_v8 = vld [vmem:[%s3930_s6 + $0x38] sm:$0xff]  }
 0x329   : > { %v2893_v45 = vpop.eup %2892  ;;  %2906 = vpow2.f32 %v1523_v37  ;;  %2713 = vmatprep.mubr.msk.bf16.mxu0 %vm1336_vm0, %v1667_v39  ;;  %2725 = vmatprep.subr.bf16.mxu1 %v2838_v8 }
 0x32a   : > { %v2895_v33 = vpop.eup %2894  ;;  %v1527_v32 = vmul.f32 1.442695, %v1464_v25  ;;  %v1598_v48 = vsel %vm1336_vm0, %v2893_v45, 0.0  ;;  %v1668_v19 = vpack.c.bf16 %v2893_v45, %v2889_v7  ;;  %2726 = vmatpush3.bf16.msra.mxu1 %v2838_v8 }
 0x32b   : > { %v1601_v58 = vsel %vm1336_vm0, %v2895_v33, 0.0  ;;  %2727 = vmatprep.subr.bf16.mxu1 %v2839_v27 }
 0x32c   : > { %2908 = vpow2.f32 %v1527_v32  ;;  %1602 = vadd.xlane.f32.xlu0 %v1601_v58  ;;  %1599 = vadd.xlane.f32.xlu1 %v1598_v48 }
 0x32d   : > { %v2897_v17 = vpop.eup %2896  ;;  %2714 = vmatmul.mubr.msk.bf16.gmra.mxu0 %vm1336_vm0, %v1668_v19 }
 0x32e   : > { %v2899_v26 = vpop.eup %2898  ;;  %v1607_v18 = vsel %vm1336_vm0, %v2897_v17, 0.0  ;;  %2728 = vmatpush3.bf16.msra.mxu1 %v2839_v27 }
 0x32f   : > { %v1604_v59 = vsel %vm1336_vm0, %v2899_v26, 0.0  ;;  %v1669_v41 = vpack.c.bf16 %v2899_v26, %v2895_v33  ;;  %2729 = vmatprep.subr.bf16.mxu1 %v2840_v4 }
 0x330   : > { %1608 = vadd.xlane.f32.xlu0 %v1607_v18  ;;  %1605 = vadd.xlane.f32.xlu1 %v1604_v59 }
 0x331   : > { %v2901_v36 = vpop.eup %2900  ;;  %2717 = vmatprep.mubr.msk.bf16.mxu0 %vm1336_vm0, %v1669_v41 }
 0x332   : > { %v2903_v29 = vpop.eup %2902  ;;  %v1610_v40 = vsel %vm1336_vm0, %v2901_v36, 0.0  ;;  %v1670_v24 = vpack.c.bf16 %v2901_v36, %v2897_v17  ;;  %2730 = vmatpush3.bf16.msra.mxu1 %v2840_v4 }
 0x333   : > { %v1613_v60 = vsel %vm1336_vm0, %v2903_v29, 0.0  ;;  %2731 = vmatprep.subr.bf16.mxu1 %v2841_v53 }
 0x334   : > { %1614 = vadd.xlane.f32.xlu0 %v1613_v60  ;;  %1611 = vadd.xlane.f32.xlu1 %v1610_v40 }
 0x335   : > { %v2905_v42 = vpop.eup %2904  ;;  %2718 = vmatmul.mubr.msk.bf16.gmra.mxu0 %vm1336_vm0, %v1670_v24 }
 0x336   : > { %v2907_v43 = vpop.eup %2906  ;;  %v1619_v13 = vsel %vm1336_vm0, %v2905_v42, 0.0  ;;  %2732 = vmatpush3.bf16.msra.mxu1 %v2841_v53 }
 0x337   : > { %v1616_v62 = vsel %vm1336_vm0, %v2907_v43, 0.0  ;;  %v1671_v10 = vpack.c.bf16 %v2907_v43, %v2903_v29  ;;  %2733 = vmatprep.subr.bf16.mxu1 %v2842_v50 }
 0x338   : > { %1620 = vadd.xlane.f32.xlu0 %v1619_v13  ;;  %1617 = vadd.xlane.f32.xlu1 %v1616_v62 }
 0x339   : > { %v2909_v11 = vpop.eup %2908  ;;  %2721 = vmatprep.mubr.msk.bf16.mxu0 %vm1336_vm0, %v1671_v10 }
 0x33a   : > { %v1622_v14 = vsel %vm1336_vm0, %v2909_v11, 0.0  ;;  %v1672_v20 = vpack.c.bf16 %v2909_v11, %v2905_v42  ;;  %2734 = vmatpush3.bf16.msra.mxu1 %v2842_v50 }
 0x33b   : > { %2735 = vmatprep.subr.bf16.mxu1 %v2843_v3 }
 0x33c   : > { %1623 = vadd.xlane.f32.xlu1 %v1622_v14 }
 0x33d   : > { %2722 = vmatmul.mubr.msk.bf16.gmra.mxu0 %vm1336_vm0, %v1672_v20 }
 0x33e   : > { %2736 = vmatpush3.bf16.msra.mxu1 %v2843_v3 }
 0x33f   : > { %2737 = vmatprep.subr.bf16.mxu1 %v2844_v56 }
 0x342   : > { %2738 = vmatpush3.bf16.msra.mxu1 %v2844_v56 }
 0x343   : > { %2739 = vmatprep.subr.bf16.mxu1 %v2845_v34 }
 0x346   : > { %2740 = vmatpush3.bf16.msra.mxu1 %v2845_v34 }
 0x384   : > { %v1531_v5 = vpop.xlane.xlu0 %1530 }
 0x385   : > { %2910 = vrcp.f32 %v1531_v5 }
 0x388   : > { %v1534_v63 = vpop.xlane.xlu1 %1533  ;;  %v1537_v47 = vpop.xlane.xlu0 %1536 }
 0x38c   : > { %v1540_v6 = vpop.xlane.xlu1 %1539  ;;  %v1543_v55 = vpop.xlane.xlu0 %1542 }
 0x38d   : > { %2912 = vrcp.f32 %v1540_v6 }
 0x38e   : > { %2914 = vrcp.f32 %v1534_v63 }
 0x38f   : > { %2916 = vrcp.f32 %v1537_v47 }
 0x390   : > { %v1549_v23 = vpop.xlane.xlu0 %1548  ;;  %2918 = vrcp.f32 %v1543_v55 }
 0x391   : > { %v1546_v35 = vpop.xlane.xlu1 %1545 }
 0x392   : > { %v2911_v46 = vpop.eup %2910 }
 0x395   : > { %v1552_v22 = vpop.xlane.xlu1 %1551  ;;  %v1555_v15 = vpop.xlane.xlu0 %1554 }
 0x396   : > { %2920 = vrcp.f32 %v1552_v22 }
 0x397   : > { %2922 = vrcp.f32 %v1546_v35 }
 0x398   : > { %2924 = vrcp.f32 %v1549_v23 }
 0x399   : > { %v1558_v61 = vpop.xlane.xlu1 %1557  ;;  %v1561_v44 = vpop.xlane.xlu0 %1560  ;;  %2926 = vrcp.f32 %v1555_v15 }
 0x39a   : > { %v2913_v51 = vpop.eup %2912 }
 0x39b   : > { %v2915_v16 = vpop.eup %2914 }
 0x39c   : > { %v2917_v9 = vpop.eup %2916 }
 0x39d   : > { %v1564_v57 = vpop.xlane.xlu1 %1563  ;;  %v1567_v2 = vpop.xlane.xlu0 %1566 }
 0x39e   : > { %2928 = vrcp.f32 %v1564_v57  ;;  %v2919_v19 = vpop.eup %2918 }
 0x39f   : > { %2930 = vrcp.f32 %v1558_v61 }
 0x3a0   : > { %2932 = vrcp.f32 %v1561_v44 }
 0x3a1   : > { %v1570_v21 = vpop.xlane.xlu1 %1569  ;;  %v1573_v49 = vpop.xlane.xlu0 %1572  ;;  %2934 = vrcp.f32 %v1567_v2 }
 0x3a3   : > { %v2921_v17 = vpop.eup %2920 }
 0x3a4   : > { %v2923_v8 = vpop.eup %2922 }
 0x3a5   : > { %v1576_v12 = vpop.xlane.xlu1 %1575  ;;  %v1579_v1 = vpop.xlane.xlu0 %1578 }
 0x3a6   : > { %v2925_v59 = vpop.eup %2924  ;;  %2936 = vrcp.f32 %v1576_v12 }
 0x3a7   : > { %2938 = vrcp.f32 %v1570_v21  ;;  %v2927_v43 = vpop.eup %2926 }
 0x3a8   : > { %2940 = vrcp.f32 %v1573_v49 }
 0x3a9   : > { %v1582_v52 = vpop.xlane.xlu1 %1581  ;;  %v1585_v48 = vpop.xlane.xlu0 %1584  ;;  %2942 = vrcp.f32 %v1579_v1 }
 0x3ab   : > { %v2929_v62 = vpop.eup %2928 }
 0x3ac   : > { %v2931_v11 = vpop.eup %2930 }
 0x3ad   : > { %v1588_v33 = vpop.xlane.xlu1 %1587  ;;  %v1591_v24 = vpop.xlane.xlu0 %1590 }
 0x3ae   : > { %v2933_v20 = vpop.eup %2932  ;;  %2944 = vrcp.f32 %v1588_v33 }
 0x3af   : > { %2946 = vrcp.f32 %v1582_v52  ;;  %v2935_v55 = vpop.eup %2934 }
 0x3b0   : > { %2948 = vrcp.f32 %v1585_v48 }
 0x3b1   : > { %v1594_v41 = vpop.xlane.xlu1 %1593  ;;  %v1597_v50 = vpop.xlane.xlu0 %1596  ;;  %2950 = vrcp.f32 %v1591_v24 }
 0x3b3   : > { %v2937_v23 = vpop.eup %2936 }
 0x3b4   : > { %v2939_v15 = vpop.eup %2938 }
 0x3b5   : > { %v1600_v10 = vpop.xlane.xlu1 %1599  ;;  %v1603_v61 = vpop.xlane.xlu0 %1602 }
 0x3b6   : > { %v2941_v21 = vpop.eup %2940  ;;  %2952 = vrcp.f32 %v1600_v10 }
 0x3b7   : > { %2954 = vrcp.f32 %v1594_v41  ;;  %v2943_v52 = vpop.eup %2942 }
 0x3b8   : > { %2956 = vrcp.f32 %v1597_v50 }
 0x3b9   : > { %v1606_v35 = vpop.xlane.xlu1 %1605  ;;  %2958 = vrcp.f32 %v1603_v61 }
 0x3c1   : > { %v2695_v0 = vpop.f32.mrf.mxu0 }
 0x3c2   : > { %v1916_v31 = vmul.f32 %v2917_v9, %v2695_v0 }
 0x3c3   : > { %v1787_v30 = vpop.f32.mrf.mxu0 }
 0x3c4   : > { %v1914_v37 = vmul.f32 %v2911_v46, %v1787_v30  ;;  %v1612_v30 = vpop.xlane.xlu1 %1611 }
 0x3c5   : > { %v2696_v38 = vpop.f32.mrf.mxu0  ;;  %2960 = vrcp.f32 %v1612_v30 }
 0x3c6   : > { %v1917_v7 = vmul.f32 %v2913_v51, %v2696_v38  ;;  %2962 = vrcp.f32 %v1606_v35 }
 0x3c7   : > { %v1790_v54 = vpop.f32.mrf.mxu0 }
 0x3c8   : > { %v1915_v28 = vmul.f32 %v2915_v16, %v1790_v54  ;;  %v1947_v25 = vpack.c.bf16 %v1917_v7, %v1916_v31  ;;  %v1609_v16 = vpop.xlane.xlu0 %1608  ;;  %v2945_v54 = vpop.eup %2944 }
 0x3c9   : > { %v2947_v9 = vpop.eup %2946  ;;  %v1618_v31 = vpop.xlane.xlu1 %1617  ;;  %2964 = vrcp.f32 %v1609_v16 }
 0x3ca   : > { %v1946_v39 = vpack.c.bf16 %v1915_v28, %v1914_v37  ;;  %v2949_v1 = vpop.eup %2948 }
 0x3cc   : > { %2741 = vmatprep.mubr.bf16.mxu1 %v1946_v39 }
 0x3cd   : > { %v2699_v45 = vpop.f32.mrf.mxu0  ;;  %2742 = vmatmul.mubr.bf16.vlgmr.msra.gmra.mxu1 %v1947_v25 }
 0x3ce   : > { %v1920_v29 = vmul.f32 %v2925_v59, %v2699_v45 }
 0x3cf   : > { %v1803_v32 = vpop.f32.mrf.mxu0 }
 0x3d0   : > { %v1918_v36 = vmul.f32 %v2919_v19, %v1803_v32  ;;  %v1615_v32 = vpop.xlane.xlu0 %1614 }
 0x3d1   : > { %v2700_v58 = vpop.f32.mrf.mxu0  ;;  %2966 = vrcp.f32 %v1615_v32 }
 0x3d2   : > { %v1921_v26 = vmul.f32 %v2921_v17, %v2700_v58  ;;  %v2951_v17 = vpop.eup %2950 }
 0x3d3   : > { %v1806_v18 = vpop.f32.mrf.mxu0 }
 0x3d4   : > { %v1919_v27 = vmul.f32 %v2923_v8, %v1806_v18  ;;  %v1949_v42 = vpack.c.bf16 %v1921_v26, %v1920_v29  ;;  %v2953_v26 = vpop.eup %2952  ;;  %v1624_v18 = vpop.xlane.xlu1 %1623 }
 0x3d5   : > { %v2703_v40 = vpop.f32.mrf.mxu0  ;;  %v2955_v59 = vpop.eup %2954  ;;  %2968 = vrcp.f32 %v1624_v18 }
 0x3d6   : > { %v1948_v60 = vpack.c.bf16 %v1919_v27, %v1918_v36  ;;  %v1924_v34 = vmul.f32 %v2933_v20, %v2703_v40  ;;  %v2957_v27 = vpop.eup %2956  ;;  %v1621_v29 = vpop.xlane.xlu0 %1620  ;;  %2970 = vrcp.f32 %v1618_v31 }
 0x3d7   : > { %v1819_v4 = vpop.f32.mrf.mxu0  ;;  %2972 = vrcp.f32 %v1621_v29 }
 0x3d8   : > { %2745 = vmatprep.mubr.bf16.mxu1 %v1948_v60  ;;  %v1922_v3 = vmul.f32 %v2927_v43, %v1819_v4 }
 0x3d9   : > { %v2704_v13 = vpop.f32.mrf.mxu0  ;;  %2746 = vmatmul.mubr.bf16.gmra.mxu1 %v1949_v42 }
 0x3da   : > { %v1925_v53 = vmul.f32 %v2929_v62, %v2704_v13  ;;  %v2959_v62 = vpop.eup %2958 }
 0x3db   : > { %v1822_v14 = vpop.f32.mrf.mxu0 }
 0x3dc   : > { %v1923_v56 = vmul.f32 %v2931_v11, %v1822_v14  ;;  %v1951_v6 = vpack.c.bf16 %v1925_v53, %v1924_v34  ;;  %v2961_v11 = vpop.eup %2960 }
 0x3dd   : > { %v2707_v63 = vpop.f32.mrf.mxu0  ;;  %v2963_v53 = vpop.eup %2962 }
 0x3de   : > { %v1950_v5 = vpack.c.bf16 %v1923_v56, %v1922_v3  ;;  %v1928_v0 = vmul.f32 %v2941_v21, %v2707_v63  ;;  %v2965_v50 = vpop.eup %2964 }
 0x3df   : > { %v1835_v47 = vpop.f32.mrf.mxu0  ;;  %v2967_v35 = vpop.eup %2966 }
 0x3e0   : > { %2749 = vmatprep.mubr.bf16.mxu1 %v1950_v5  ;;  %v1926_v2 = vmul.f32 %v2935_v55, %v1835_v47 }
 0x3e1   : > { %v2708_v22 = vpop.f32.mrf.mxu0  ;;  %2750 = vmatmul.mubr.bf16.gmra.mxu1 %v1951_v6 }
 0x3e2   : > { %v1929_v57 = vmul.f32 %v2937_v23, %v2708_v22  ;;  %v2969_v22 = vpop.eup %2968 }
 0x3e3   : > { %v1838_v44 = vpop.f32.mrf.mxu0  ;;  %v2971_v23 = vpop.eup %2970 }
 0x3e4   : > { %v1927_v12 = vmul.f32 %v2939_v15, %v1838_v44  ;;  %v1953_v38 = vpack.c.bf16 %v1929_v57, %v1928_v0  ;;  %v2973_v57 = vpop.eup %2972 }
 0x3e5   : > { %v2711_v49 = vpop.f32.mrf.mxu0 }
 0x3e6   : > { %v1952_v46 = vpack.c.bf16 %v1927_v12, %v1926_v2  ;;  %v1932_v45 = vmul.f32 %v2949_v1, %v2711_v49  ;;  %v3811_v49 = vld [vmem:[%s3931_s7] ss:$0 sm:$0xff]  ;;  %v2976_v1 = vld [vmem:[%s3162_s12 + $0x18] sm:$0xff] }
 0x3e7   : > { %v1851_v51 = vpop.f32.mrf.mxu0 }
 0x3e8   : > { %2753 = vmatprep.mubr.bf16.mxu1 %v1952_v46  ;;  %v1930_v39 = vmul.f32 %v2943_v52, %v1851_v51  ;;  %v2974_v51 = vld [vmem:[%s3162_s12 + $0x10] sm:$0xff] }
 0x3e9   : > { %v2712_v7 = vpop.f32.mrf.mxu0  ;;  %2754 = vmatmul.mubr.bf16.gmra.mxu1 %v1953_v38 }
 0x3ea   : > { %v1933_v37 = vmul.f32 %v2945_v54, %v2712_v7  ;;  %v2975_v54 = vld [vmem:[%s3162_s12] sm:$0xff] }
 0x3eb   : > { %v1854_v28 = vpop.f32.mrf.mxu0 }
 0x3ec   : > { %v1931_v25 = vmul.f32 %v2947_v9, %v1854_v28  ;;  %v1955_v19 = vpack.c.bf16 %v1933_v37, %v1932_v45 }
 0x3ed   : > { %v2715_v33 = vpop.f32.mrf.mxu0 }
 0x3ee   : > { %v1954_v48 = vpack.c.bf16 %v1931_v25, %v1930_v39  ;;  %v1936_v60 = vmul.f32 %v2957_v27, %v2715_v33  ;;  %v2977_v25 = vld [vmem:[%s3162_s12 + $0x8] sm:$0xff] }
 0x3ef   : > { %v1867_v58 = vpop.f32.mrf.mxu0 }
 0x3f0   : > { %2757 = vmatprep.mubr.bf16.mxu1 %v1954_v48  ;;  %v1934_v40 = vmul.f32 %v2951_v17, %v1867_v58 }
 0x3f1   : > { %v2716_v8 = vpop.f32.mrf.mxu0  ;;  %2758 = vmatmul.mubr.bf16.gmra.mxu1 %v1955_v19  ;;  %v2978_v19 = vld [vmem:[%s3162_s12 + $0x30] sm:$0xff] }
 0x3f2   : > { %v1937_v41 = vmul.f32 %v2953_v26, %v2716_v8  ;;  %v2979_v26 = vld [vmem:[%s3162_s12 + $0x20] sm:$0xff] }
 0x3f3   : > { %v1870_v36 = vpop.f32.mrf.mxu0 }
 0x3f4   : > { %v1935_v24 = vmul.f32 %v2955_v59, %v1870_v36  ;;  %v1957_v43 = vpack.c.bf16 %v1937_v41, %v1936_v60  ;;  %v2980_v36 = vld [vmem:[%s3162_s12 + $0x38] sm:$0xff] }
 0x3f5   : > { %v2719_v42 = vpop.f32.mrf.mxu0 }
 0x3f6   : > { %v1956_v4 = vpack.c.bf16 %v1935_v24, %v1934_v40  ;;  %v1940_v34 = vmul.f32 %v2965_v50, %v2719_v42  ;;  %v2981_v24 = vld [vmem:[%s3162_s12 + $0x28] sm:$0xff]  ;;  %v2984_v50 = vld [vmem:[%s3162_s12 + $0x58] sm:$0xff] }
 0x3f7   : > { %v1883_v13 = vpop.f32.mrf.mxu0 }
 0x3f8   : > { %2761 = vmatprep.mubr.bf16.mxu1 %v1956_v4  ;;  %v1938_v3 = vmul.f32 %v2959_v62, %v1883_v13 }
 0x3f9   : > { %v2720_v10 = vpop.f32.mrf.mxu0  ;;  %2762 = vmatmul.mubr.bf16.gmra.mxu1 %v1957_v43  ;;  %v2982_v43 = vld [vmem:[%s3162_s12 + $0x50] sm:$0xff] }
 0x3fa   : > { %v1941_v14 = vmul.f32 %v2961_v11, %v2720_v10  ;;  %v2983_v11 = vld [vmem:[%s3162_s12 + $0x40] sm:$0xff] }
 0x3fb   : > { %v1886_v20 = vpop.f32.mrf.mxu0 }
 0x3fc   : > { %v1939_v56 = vmul.f32 %v2963_v53, %v1886_v20  ;;  %v1959_v6 = vpack.c.bf16 %v1941_v14, %v1940_v34 }
 0x3fd   : > { %v2723_v63 = vpop.f32.mrf.mxu0 }
 0x3fe   : > { %v1958_v5 = vpack.c.bf16 %v1939_v56, %v1938_v3  ;;  %v1944_v2 = vmul.f32 %v2973_v57, %v2723_v63  ;;  %v2985_v63 = vld [vmem:[%s3162_s12 + $0x48] sm:$0xff] }
 0x3ff   : > { %v1899_v47 = vpop.f32.mrf.mxu0 }
 0x400   : > { %2765 = vmatprep.mubr.bf16.mxu1 %v1958_v5  ;;  %v1942_v44 = vmul.f32 %v2967_v35, %v1899_v47  ;;  %v2986_v35 = vld [vmem:[%s3162_s12 + $0x70] sm:$0xff] }
 0x401   : > { %v2724_v55 = vpop.f32.mrf.mxu0  ;;  %2766 = vmatmul.mubr.bf16.gmra.mxu1 %v1959_v6 }
 0x402   : > { %v1945_v61 = vmul.f32 %v2969_v22, %v2724_v55 }
 0x403   : > { %v1902_v15 = vpop.f32.mrf.mxu0 }
 0x404   : > { %v1943_v21 = vmul.f32 %v2971_v23, %v1902_v15  ;;  %v1961_v0 = vpack.c.bf16 %v1945_v61, %v1944_v2  ;;  %v2987_v61 = vld [vmem:[%s3162_s12 + $0x60] sm:$0xff] }
 0x406   : > { %v1960_v12 = vpack.c.bf16 %v1943_v21, %v1942_v44  ;;  %v2988_v21 = vld [vmem:[%s3162_s12 + $0x78] sm:$0xff] }
 0x408   : > { %2769 = vmatprep.mubr.bf16.mxu1 %v1960_v12 }
 0x409   : > { %2770 = vmatmul.mubr.bf16.gmra.mxu1 %v1961_v0 }
 0x48d   : > { %v2743_v30 = vpop.f32.mrf.mxu1 }
 0x48e   : > { %v2076_v46 = vadd.f32 %v2743_v30, %v3811_v49  ;;  %v2989_v30 = vld [vmem:[%s3162_s12 + $0x68] sm:$0xff] }
 0x48f   : > { %v2067_v38 = vpop.f32.mrf.mxu1 }
 0x490   : > { %v2196_v16 = vadd.f32 %v2974_v51, %v2076_v46  ;;  %v2068_v52 = vadd.f32 %v3811_v49, %v2067_v38 }
 0x491   : > { %v2744_v7 = vpop.f32.mrf.mxu1 }
 0x492   : > { %2228 = vst [vmem:[%s3818_s18 + $0x10] sm:$0xff] %v2196_v16  ;;  %v2194_v9 = vadd.f32 %v2975_v54, %v2068_v52  ;;  %v2079_v37 = vadd.f32 %v2744_v7, %v3811_v49  ;;  %v2990_v16 = vld [vmem:[%s3162_s12 + $0x90] sm:$0xff] }
 0x493   : > { %v2070_v28 = vpop.f32.mrf.mxu1 }
 0x494   : > { %2226 = vst [vmem:[%s3818_s18] sm:$0xff] %v2194_v9  ;;  %v2197_v31 = vadd.f32 %v2976_v1, %v2079_v37  ;;  %v2071_v39 = vadd.f32 %v3811_v49, %v2070_v28  ;;  %v2991_v9 = vld [vmem:[%s3162_s12 + $0x80] sm:$0xff] }
 0x496   : > { %2229 = vst [vmem:[%s3818_s18 + $0x18] sm:$0xff] %v2197_v31  ;;  %v2195_v45 = vadd.f32 %v2977_v25, %v2071_v39  ;;  %v2992_v31 = vld [vmem:[%s3162_s12 + $0x98] sm:$0xff] }
 0x498   : > { %2227 = vst [vmem:[%s3818_s18 + $0x8] sm:$0xff] %v2195_v45 }
 0x499   : > { %v2747_v33 = vpop.f32.mrf.mxu1 }
 0x49a   : > { %v2092_v32 = vadd.f32 %v2747_v33, %v3811_v49  ;;  %v2993_v33 = vld [vmem:[%s3162_s12 + $0x88] sm:$0xff] }
 0x49b   : > { %v2083_v48 = vpop.f32.mrf.mxu1 }
 0x49c   : > { %v2200_v58 = vadd.f32 %v2978_v19, %v2092_v32  ;;  %v2084_v17 = vadd.f32 %v3811_v49, %v2083_v48 }
 0x49d   : > { %v2748_v8 = vpop.f32.mrf.mxu1 }
 0x49e   : > { %2232 = vst [vmem:[%s3818_s18 + $0x30] sm:$0xff] %v2200_v58  ;;  %v2198_v18 = vadd.f32 %v2979_v26, %v2084_v17  ;;  %v2095_v59 = vadd.f32 %v2748_v8, %v3811_v49  ;;  %v2994_v58 = vld [vmem:[%s3162_s12 + $0xb0] sm:$0xff] }
 0x49f   : > { %v2086_v41 = vpop.f32.mrf.mxu1 }
 0x4a0   : > { %2230 = vst [vmem:[%s3818_s18 + $0x20] sm:$0xff] %v2198_v18  ;;  %v2201_v27 = vadd.f32 %v2980_v36, %v2095_v59  ;;  %v2087_v29 = vadd.f32 %v3811_v49, %v2086_v41  ;;  %v2995_v18 = vld [vmem:[%s3162_s12 + $0xa0] sm:$0xff] }
 0x4a1   : > { %v2751_v40 = vpop.f32.mrf.mxu1 }
 0x4a2   : > { %2233 = vst [vmem:[%s3818_s18 + $0x38] sm:$0xff] %v2201_v27  ;;  %v2199_v60 = vadd.f32 %v2981_v24, %v2087_v29  ;;  %v2108_v42 = vadd.f32 %v2751_v40, %v3811_v49  ;;  %v2996_v27 = vld [vmem:[%s3162_s12 + $0xb8] sm:$0xff] }
 0x4a3   : > { %v2099_v4 = vpop.f32.mrf.mxu1 }
 0x4a4   : > { %2231 = vst [vmem:[%s3818_s18 + $0x28] sm:$0xff] %v2199_v60  ;;  %v2204_v13 = vadd.f32 %v2982_v43, %v2108_v42  ;;  %v2100_v62 = vadd.f32 %v3811_v49, %v2099_v4  ;;  %v2997_v60 = vld [vmem:[%s3162_s12 + $0xa8] sm:$0xff] }
 0x4a5   : > { %v2752_v10 = vpop.f32.mrf.mxu1 }
 0x4a6   : > { %2236 = vst [vmem:[%s3818_s18 + $0x50] sm:$0xff] %v2204_v13  ;;  %v2202_v53 = vadd.f32 %v2983_v11, %v2100_v62  ;;  %v2111_v14 = vadd.f32 %v2752_v10, %v3811_v49  ;;  %v2998_v13 = vld [vmem:[%s3162_s12 + $0xd0] sm:$0xff] }
 0x4a7   : > { %v2102_v20 = vpop.f32.mrf.mxu1 }
 0x4a8   : > { %2234 = vst [vmem:[%s3818_s18 + $0x40] sm:$0xff] %v2202_v53  ;;  %v2205_v3 = vadd.f32 %v2984_v50, %v2111_v14  ;;  %v2103_v56 = vadd.f32 %v3811_v49, %v2102_v20  ;;  %v2999_v53 = vld [vmem:[%s3162_s12 + $0xc0] sm:$0xff] }
 0x4a9   : > { %v2755_v34 = vpop.f32.mrf.mxu1 }
 0x4aa   : > { %2237 = vst [vmem:[%s3818_s18 + $0x58] sm:$0xff] %v2205_v3  ;;  %v2203_v5 = vadd.f32 %v2985_v63, %v2103_v56  ;;  %v2124_v6 = vadd.f32 %v2755_v34, %v3811_v49  ;;  %v3000_v3 = vld [vmem:[%s3162_s12 + $0xd8] sm:$0xff] }
 0x4ab   : > { %v2115_v47 = vpop.f32.mrf.mxu1 }
 0x4ac   : > { %2235 = vst [vmem:[%s3818_s18 + $0x48] sm:$0xff] %v2203_v5  ;;  %v2208_v55 = vadd.f32 %v2986_v35, %v2124_v6  ;;  %v2116_v22 = vadd.f32 %v3811_v49, %v2115_v47  ;;  %v3001_v5 = vld [vmem:[%s3162_s12 + $0xc8] sm:$0xff] }
 0x4ad   : > { %v2756_v23 = vpop.f32.mrf.mxu1 }
 0x4ae   : > { %2240 = vst [vmem:[%s3818_s18 + $0x70] sm:$0xff] %v2208_v55  ;;  %v2206_v15 = vadd.f32 %v2987_v61, %v2116_v22  ;;  %v2127_v57 = vadd.f32 %v2756_v23, %v3811_v49  ;;  %v3002_v55 = vld [vmem:[%s3162_s12 + $0xf0] sm:$0xff] }
 0x4af   : > { %v2118_v44 = vpop.f32.mrf.mxu1 }
 0x4b0   : > { %2238 = vst [vmem:[%s3818_s18 + $0x60] sm:$0xff] %v2206_v15  ;;  %v2209_v2 = vadd.f32 %v2988_v21, %v2127_v57  ;;  %v2119_v12 = vadd.f32 %v3811_v49, %v2118_v44  ;;  %v3003_v15 = vld [vmem:[%s3162_s12 + $0xe0] sm:$0xff] }
 0x4b1   : > { %v2759_v0 = vpop.f32.mrf.mxu1 }
 0x4b2   : > { %2241 = vst [vmem:[%s3818_s18 + $0x78] sm:$0xff] %v2209_v2  ;;  %v2207_v46 = vadd.f32 %v2989_v30, %v2119_v12  ;;  %v2140_v38 = vadd.f32 %v2759_v0, %v3811_v49  ;;  %v3004_v2 = vld [vmem:[%s3162_s12 + $0xf8] sm:$0xff]  ;;  %v3005_v30 = vld [vmem:[%s3162_s12 + $0xe8] sm:$0xff] }
 0x4b3   : > { %v2131_v51 = vpop.f32.mrf.mxu1 }
 0x4b4   : > { %2239 = vst [vmem:[%s3818_s18 + $0x68] sm:$0xff] %v2207_v46  ;;  %v2212_v52 = vadd.f32 %v2990_v16, %v2140_v38  ;;  %v2132_v7 = vadd.f32 %v3811_v49, %v2131_v51 }
 0x4b5   : > { %v2760_v54 = vpop.f32.mrf.mxu1 }
 0x4b6   : > { %2244 = vst [vmem:[%s3818_s18 + $0x90] sm:$0xff] %v2212_v52  ;;  %v2210_v37 = vadd.f32 %v2991_v9, %v2132_v7  ;;  %v2143_v28 = vadd.f32 %v2760_v54, %v3811_v49 }
 0x4b7   : > { %v2134_v1 = vpop.f32.mrf.mxu1 }
 0x4b8   : > { %2242 = vst [vmem:[%s3818_s18 + $0x80] sm:$0xff] %v2210_v37  ;;  %v2213_v39 = vadd.f32 %v2992_v31, %v2143_v28  ;;  %v2135_v25 = vadd.f32 %v3811_v49, %v2134_v1 }
 0x4b9   : > { %v2763_v45 = vpop.f32.mrf.mxu1 }
 0x4ba   : > { %2245 = vst [vmem:[%s3818_s18 + $0x98] sm:$0xff] %v2213_v39  ;;  %v2211_v32 = vadd.f32 %v2993_v33, %v2135_v25  ;;  %v2156_v48 = vadd.f32 %v2763_v45, %v3811_v49 }
 0x4bb   : > { %v2147_v19 = vpop.f32.mrf.mxu1 }
 0x4bc   : > { %2243 = vst [vmem:[%s3818_s18 + $0x88] sm:$0xff] %v2211_v32  ;;  %v2216_v17 = vadd.f32 %v2994_v58, %v2156_v48  ;;  %v2148_v8 = vadd.f32 %v3811_v49, %v2147_v19 }
 0x4bd   : > { %v2764_v26 = vpop.f32.mrf.mxu1 }
 0x4be   : > { %2248 = vst [vmem:[%s3818_s18 + $0xb0] sm:$0xff] %v2216_v17  ;;  %v2214_v59 = vadd.f32 %v2995_v18, %v2148_v8  ;;  %v2159_v41 = vadd.f32 %v2764_v26, %v3811_v49 }
 0x4bf   : > { %v2150_v36 = vpop.f32.mrf.mxu1 }
 0x4c0   : > { %2246 = vst [vmem:[%s3818_s18 + $0xa0] sm:$0xff] %v2214_v59  ;;  %v2217_v29 = vadd.f32 %v2996_v27, %v2159_v41  ;;  %v2151_v40 = vadd.f32 %v3811_v49, %v2150_v36 }
 0x4c1   : > { %v2767_v24 = vpop.f32.mrf.mxu1 }
 0x4c2   : > { %2249 = vst [vmem:[%s3818_s18 + $0xb8] sm:$0xff] %v2217_v29  ;;  %v2215_v42 = vadd.f32 %v2997_v60, %v2151_v40  ;;  %v2172_v4 = vadd.f32 %v2767_v24, %v3811_v49 }
 0x4c3   : > { %v2163_v43 = vpop.f32.mrf.mxu1 }
 0x4c4   : > { %2247 = vst [vmem:[%s3818_s18 + $0xa8] sm:$0xff] %v2215_v42  ;;  %v2220_v62 = vadd.f32 %v2998_v13, %v2172_v4  ;;  %v2164_v10 = vadd.f32 %v3811_v49, %v2163_v43 }
 0x4c5   : > { %v2768_v11 = vpop.f32.mrf.mxu1 }
 0x4c6   : > { %2252 = vst [vmem:[%s3818_s18 + $0xd0] sm:$0xff] %v2220_v62  ;;  %v2218_v14 = vadd.f32 %v2999_v53, %v2164_v10  ;;  %v2175_v20 = vadd.f32 %v2768_v11, %v3811_v49 }
 0x4c7   : > { %v2166_v50 = vpop.f32.mrf.mxu1 }
 0x4c8   : > { %2250 = vst [vmem:[%s3818_s18 + $0xc0] sm:$0xff] %v2218_v14  ;;  %v2221_v56 = vadd.f32 %v3000_v3, %v2175_v20  ;;  %v2167_v34 = vadd.f32 %v3811_v49, %v2166_v50 }
 0x4c9   : > { %v2771_v63 = vpop.f32.mrf.mxu1 }
 0x4ca   : > { %2253 = vst [vmem:[%s3818_s18 + $0xd8] sm:$0xff] %v2221_v56  ;;  %v2219_v6 = vadd.f32 %v3001_v5, %v2167_v34  ;;  %v2188_v47 = vadd.f32 %v2771_v63, %v3811_v49 }
 0x4cb   : > { %v2179_v35 = vpop.f32.mrf.mxu1 }
 0x4cc   : > { %2251 = vst [vmem:[%s3818_s18 + $0xc8] sm:$0xff] %v2219_v6  ;;  %v2224_v22 = vadd.f32 %v3002_v55, %v2188_v47  ;;  %v2180_v23 = vadd.f32 %v3811_v49, %v2179_v35 }
 0x4cd   : > { %v2772_v61 = vpop.f32.mrf.mxu1 }
 0x4ce   : > { %2256 = vst [vmem:[%s3818_s18 + $0xf0] sm:$0xff] %v2224_v22  ;;  %v2222_v57 = vadd.f32 %v3003_v15, %v2180_v23  ;;  %v2191_v44 = vadd.f32 %v2772_v61, %v3811_v49 }
 0x4cf   : > { %v2182_v21 = vpop.f32.mrf.mxu1 }
 0x4d0   : > { %2254 = vst [vmem:[%s3818_s18 + $0xe0] sm:$0xff] %v2222_v57  ;;  %v2225_v12 = vadd.f32 %v3004_v2, %v2191_v44  ;;  %v2183_v0 = vadd.f32 %v3811_v49, %v2182_v21 }
 0x4d2   : > { %2257 = vst [vmem:[%s3818_s18 + $0xf8] sm:$0xff] %v2225_v12  ;;  %v2223_v46 = vadd.f32 %v3005_v30, %v2183_v0 }
 0x4d4   : > { %2255 = vst [vmem:[%s3818_s18 + $0xe8] sm:$0xff] %v2223_v46 }
 0x4d5 PF: > { %s18_s29 = sadd.s32 1, %s3028_s29   ;;  %s3966_s27 = smov %s3024_s28 }
 0x4d6   : > { %p15_p5 = scmp.ge.s32.totalorder %s18_s29, 4   ;;  %s3967_s28 = smov %s3969_s30 }
 0x4d8   :  { %17 = sbr.rel (!%p15_p5) target bundleno = 2 (0x2), region = 89 }

</bundles_post_ra>
